<compile_context>
chip_gen: v5e
topology: v5e:2x2
jax: 0.10.0
libtpu: 0.0.40
codegen_flags: <defaults>
</compile_context>

<pallas_src>
import jax
import jax.numpy as jnp
from jax.experimental import pallas as pl
from jax.experimental.pallas import tpu as pltpu

# --- module hyper-parameters (derived from the reference script) -------------
TEXT = 'hello world good morning see you hello world good night'
WORDS = TEXT.split(' ')
VOCAB = sorted(set(WORDS))          # deterministic ordering
VOCAB_SIZE = len(VOCAB)             # 7
HIDDEN_SIZE = 50
NUM_LAYERS = 1
INPUT_SIZE = VOCAB_SIZE
OUTPUT_SIZE = VOCAB_SIZE

# --- padded kernel dimensions -------------------------------------------------
HPAD = 128     # per-gate hidden padded to one lane tile -> gate slices tile-aligned
VPAD = 128     # logits lane-padded -> unmasked full-width store
SUBLANE = 8


def _round_up(x, m):
    return (x + m - 1) // m * m


# --- Pallas kernel ------------------------------------------------------------
def _lstm_decoder_kernel(ids_ref, h0_ref, c0_ref, xtab_ref, w_hh_ref,
                         w_dec_ref, b_dec_ref,
                         logits_ref, h_out_ref, c_out_ref,
                         xproj_ref):
    """Fused token-gather + LSTM recurrence + decoder (all VMEM-resident, no grid).

    Shapes:
      ids_ref    : (B, T)       int32 SMEM  token ids (batch-first, as given)
      h0_ref     : (Bp, Hp)     f32   initial hidden state (padded)
      c0_ref     : (Bp, Hp)     f32   initial cell state (padded)
      xtab_ref   : (Vp, 4*Hp)   f32   precomputed  embedding @ W_ih + (b_ih+b_hh),
                                      gate order [i|f|g|o], each gate 128 lanes
      w_hh_ref   : (Hp, 4*Hp)   bf16  fused hidden->gate weights [i|f|g|o]
      w_dec_ref  : (Hp, Vp)     bf16  decoder weight (transposed nn.Linear weight)
      b_dec_ref  : (1, Vp)      f32   decoder bias
      logits_ref : (Bp, Vp)     f32   decoder(last hidden)
      h_out_ref  : (Bp, Hp)     f32   final hidden state (aliased onto h0 buffer)
      c_out_ref  : (Bp, Hp)     f32   final cell state  (aliased onto c0 buffer)
      xproj_ref  : (T*Bp, 4*Hp) f32   VMEM scratch: gathered per-token projections
    """
    Bp, Hp = h0_ref.shape
    B, T = ids_ref.shape

    # ---- input path: one table-row gather per real (t, b) token -------------
    # The embedding lookup, input projection and both biases were folded into
    # xtab at pack time, so there is no input-side matmul left in the kernel.
    xproj_ref[...] = jnp.zeros_like(xproj_ref)        # padded batch rows := 0
    for t in range(T):
        for b in range(B):
            xproj_ref[pl.ds(t * Bp + b, 1), :] = (
                xtab_ref[pl.ds(ids_ref[b, t], 1), :])

    # ---- serial LSTM recurrence ---------------------------------------------
    w_hh = w_hh_ref[...]
    h = h0_ref[...]
    c = c0_ref[...]
    # TODO(synk): if the bundle dump shows Mosaic re-pushing the (Hp, 4Hp) RHS every
    # step, drive the MXU explicitly (pltpu.matmul_push_rhs once, matmul_acc_lhs /
    # matmul_pop per step) or pack gates into 256 lanes + pltpu.roll realignment.
    for t in range(T):
        pre = (xproj_ref[t * Bp:(t + 1) * Bp, :]
               + jnp.dot(h.astype(jnp.bfloat16), w_hh,
                         preferred_element_type=jnp.float32))
        # Gate slices are lane-tile aligned (multiples of 128).
        i_g = jax.nn.sigmoid(pre[:, 0 * Hp:1 * Hp])
        f_g = jax.nn.sigmoid(pre[:, 1 * Hp:2 * Hp])
        g_g = jnp.tanh(pre[:, 2 * Hp:3 * Hp])
        o_g = jax.nn.sigmoid(pre[:, 3 * Hp:4 * Hp])
        c = f_g * c + i_g * g_g
        h = o_g * jnp.tanh(c)

    h_out_ref[...] = h
    c_out_ref[...] = c
    logits_ref[...] = (
        jnp.dot(h.astype(jnp.bfloat16), w_dec_ref[...],
                preferred_element_type=jnp.float32)
        + b_dec_ref[...])


# --- parameter handling ---------------------------------------------------------
def init_params(key, vocab_size=VOCAB_SIZE, hidden=HIDDEN_SIZE,
                output_size=OUTPUT_SIZE):
    """Deterministic logical parameters matching the PyTorch module's shapes."""
    ks = jax.random.split(key, 6)
    bound = 1.0 / jnp.sqrt(hidden)
    return {
        # nn.Embedding(vocab, hidden): N(0, 1)
        'embedding': jax.random.normal(ks[0], (vocab_size, hidden), jnp.float32),
        # nn.LSTM weights, per-gate stacked & pre-transposed so the kernel does x @ W
        'w_ih': jax.random.uniform(ks[1], (4, hidden, hidden), jnp.float32,
                                   -bound, bound),
        'w_hh': jax.random.uniform(ks[2], (4, hidden, hidden), jnp.float32,
                                   -bound, bound),
        # combined bias b_ih + b_hh, per gate
        'b': jax.random.uniform(ks[3], (4, 1, hidden), jnp.float32,
                                -2 * bound, 2 * bound),
        # nn.Linear(hidden, output): weight (V, H) stored transposed -> (H, V)
        'w_dec': jax.random.uniform(ks[4], (hidden, output_size), jnp.float32,
                                    -bound, bound),
        'b_dec': jax.random.uniform(ks[5], (1, output_size), jnp.float32,
                                    -bound, bound),
    }


def pack_params(params, vocab_size=VOCAB_SIZE, hidden=HIDDEN_SIZE,
                output_size=OUTPUT_SIZE):
    """Pad & fuse logical parameters into the kernel's lane-aligned layout.

    Done once, outside jit.  The embedding, the input projection and the combined
    bias are folded into a single (Vp, 4*Hp) f32 table in full f32 precision.
    Padded rows/cols are zero, so padded hidden lanes stay exactly zero through
    the recurrence (pre=0 -> g=tanh(0)=0 -> c_pad stays 0 -> h_pad stays 0).
    """
    H, V = hidden, output_size
    Hp, Vp = HPAD, VPAD
    Vrows = _round_up(max(vocab_size, SUBLANE), SUBLANE)

    # xproj_table[v, g*Hp : g*Hp+H] = embedding[v] @ w_ih[g] + b[g]
    gate_tabs = []
    for g in range(4):
        t = params['embedding'] @ params['w_ih'][g] + params['b'][g]   # (V, H)
        gate_tabs.append(jnp.pad(t, ((0, 0), (0, Hp - H))))            # (V, Hp)
    xproj_table = jnp.concatenate(gate_tabs, axis=1)                   # (V, 4Hp)
    xproj_table = jnp.pad(xproj_table, ((0, Vrows - vocab_size), (0, 0)))

    def pad_gate_mat(w):            # (H, H) -> (Hp, Hp)
        return jnp.pad(w, ((0, Hp - H), (0, Hp - H)))

    w_hh_fused = jnp.concatenate(
        [pad_gate_mat(params['w_hh'][g]) for g in range(4)], axis=1)   # (Hp, 4Hp)

    return {
        'xproj_table': xproj_table.astype(jnp.float32),                 # (Vp, 4Hp)
        'w_hh': w_hh_fused.astype(jnp.bfloat16),                        # (Hp, 4Hp)
        'w_dec': jnp.pad(params['w_dec'],
                         ((0, Hp - H), (0, Vp - V))).astype(jnp.bfloat16),  # (Hp, Vp)
        'b_dec': jnp.pad(params['b_dec'],
                         ((0, 0), (0, Vp - V))).astype(jnp.float32),        # (1, Vp)
    }


def init_hidden(batch_size, hidden=HIDDEN_SIZE, num_layers=NUM_LAYERS):
    return (jnp.zeros((num_layers, batch_size, hidden), jnp.float32),
            jnp.zeros((num_layers, batch_size, hidden), jnp.float32))


# --- wrapper ------------------------------------------------------------------
@jax.jit
def lstm_model_forward(packed, input_ids, hidden):
    """Mirrors LSTMModel.forward: returns (logits, (h_n, c_n)) in PyTorch layout."""
    h0_full, c0_full = hidden                     # (1, B, H) each
    B, T = input_ids.shape
    H, V = HIDDEN_SIZE, OUTPUT_SIZE
    Hp, Vp = HPAD, VPAD
    Bp = _round_up(max(B, SUBLANE), SUBLANE)

    # Only remaining wrapper glue: pad the recurrent state to the kernel layout.
    # TODO(synk): for autoregressive loops, keep (h, c) in the padded (Bp, Hp)
    # layout between calls to also drop these two pads and the output slices.
    h0 = jnp.pad(h0_full[0].astype(jnp.float32), ((0, Bp - B), (0, Hp - H)))
    c0 = jnp.pad(c0_full[0].astype(jnp.float32), ((0, Bp - B), (0, Hp - H)))

    smem = pl.BlockSpec(memory_space=pltpu.MemorySpace.SMEM)
    vmem = pl.BlockSpec(memory_space=pltpu.MemorySpace.VMEM)
    logits_p, h_p, c_p = pl.pallas_call(
        _lstm_decoder_kernel,
        out_shape=(
            jax.ShapeDtypeStruct((Bp, Vp), jnp.float32),
            jax.ShapeDtypeStruct((Bp, Hp), jnp.float32),
            jax.ShapeDtypeStruct((Bp, Hp), jnp.float32),
        ),
        in_specs=[smem, vmem, vmem, vmem, vmem, vmem, vmem],
        out_specs=(vmem, vmem, vmem),
        scratch_shapes=[pltpu.VMEM((T * Bp, 4 * Hp), jnp.float32)],
        # recurrent state updated in place (h0 -> h_n, c0 -> c_n buffers)
        input_output_aliases={1: 1, 2: 2},
    )(input_ids.astype(jnp.int32), h0, c0, packed['xproj_table'],
      packed['w_hh'], packed['w_dec'], packed['b_dec'])

    logits = logits_p[:B, :V]
    h_n = h_p[:B, :H][None, :, :]
    c_n = c_p[:B, :H][None, :, :]
    return logits, (h_n, c_n)


# --- pure-JAX (f32) reference for a correctness sanity check -------------------
def _reference_forward(params, input_ids, hidden):
    h = hidden[0][0]
    c = hidden[1][0]
    emb = jnp.take(params['embedding'], input_ids, axis=0)        # (B, T, H)
    T = emb.shape[1]
    for t in range(T):
        x_t = emb[:, t, :]
        i = jax.nn.sigmoid(x_t @ params['w_ih'][0] + h @ params['w_hh'][0]
                           + params['b'][0])
        f = jax.nn.sigmoid(x_t @ params['w_ih'][1] + h @ params['w_hh'][1]
                           + params['b'][1])
        g = jnp.tanh(x_t @ params['w_ih'][2] + h @ params['w_hh'][2]
                     + params['b'][2])
        o = jax.nn.sigmoid(x_t @ params['w_ih'][3] + h @ params['w_hh'][3]
                           + params['b'][3])
        c = f * c + i * g
        h = o * jnp.tanh(c)
    logits = h @ params['w_dec'] + params['b_dec']
    return logits, (h[None], c[None])


if __name__ == "__main__":
    key = jax.random.PRNGKey(0)
    pkey, ikey = jax.random.split(key)

    params = init_params(pkey)
    packed = pack_params(params)

    batch_size = 2
    seq_len = 8
    input_ids = jax.random.randint(ikey, (batch_size, seq_len), 0, VOCAB_SIZE,
                                   dtype=jnp.int32)
    hidden = init_hidden(batch_size)

    logits, (h_n, c_n) = lstm_model_forward(packed, input_ids, hidden)
    jax.block_until_ready((logits, h_n, c_n))

    ref_logits, (ref_h, ref_c) = _reference_forward(params, input_ids, hidden)
    assert logits.shape == (batch_size, OUTPUT_SIZE)
    assert h_n.shape == (NUM_LAYERS, batch_size, HIDDEN_SIZE)
    assert c_n.shape == (NUM_LAYERS, batch_size, HIDDEN_SIZE)
    # bf16 recurrent/decoder matmul operands (f32 accumulation) vs f32 reference.
    assert jnp.allclose(logits, ref_logits, atol=5e-2, rtol=5e-2)
    assert jnp.allclose(h_n, ref_h, atol=5e-2, rtol=5e-2)
    assert jnp.allclose(c_n, ref_c, atol=5e-2, rtol=5e-2)

    print("KERNEL_OK")
</pallas_src>

<mosaic_0001>
module attributes {stable_mosaic.version = 11 : i64} {
  func.func @_lstm_decoder_kernel(%arg0: memref<2x8xi32, #tpu.memory_space<smem>>, %arg1: memref<8x128xf32, #tpu.memory_space<vmem>>, %arg2: memref<8x128xf32, #tpu.memory_space<vmem>>, %arg3: memref<8x512xf32, #tpu.memory_space<vmem>>, %arg4: memref<128x512xbf16, #tpu.memory_space<vmem>>, %arg5: memref<128x128xbf16, #tpu.memory_space<vmem>>, %arg6: memref<1x128xf32, #tpu.memory_space<vmem>>, %arg7: memref<8x128xf32, #tpu.memory_space<vmem>>, %arg8: memref<8x128xf32, #tpu.memory_space<vmem>>, %arg9: memref<8x128xf32, #tpu.memory_space<vmem>>, %arg10: memref<64x512xf32, #tpu.memory_space<vmem>>) attributes {dimension_semantics = [], scalar_prefetch = 0 : i64, scratch_operands = 1 : i64, tpu.core_type = #tpu.core_type<tc>} {
    %cst = arith.constant 0.000000e+00 : f32
    %0 = vector.broadcast %cst : f32 to vector<64x512xf32>
    %c0 = arith.constant 0 : index
    %c0_0 = arith.constant 0 : index
    %1 = vector.load %arg10[%c0, %c0_0] : memref<64x512xf32, #tpu.memory_space<vmem>>, vector<64x512xf32>
    tpu.vector_store %arg10[%c0, %c0_0], %0 {strides = array<i32>} : memref<64x512xf32, #tpu.memory_space<vmem>>, vector<64x512xf32>,
    %c0_1 = arith.constant 0 : index
    %c0_2 = arith.constant 0 : index
    %2 = memref.load %arg0[%c0_1, %c0_2] : memref<2x8xi32, #tpu.memory_space<smem>>
    %3 = arith.index_cast %2 : i32 to index
    %c0_3 = arith.constant 0 : index
    %4 = vector.load %arg3[%3, %c0_3] : memref<8x512xf32, #tpu.memory_space<vmem>>, vector<1x512xf32>
    %c0_4 = arith.constant 0 : index
    %c0_5 = arith.constant 0 : index
    %5 = vector.load %arg10[%c0_4, %c0_5] : memref<64x512xf32, #tpu.memory_space<vmem>>, vector<1x512xf32>
    tpu.vector_store %arg10[%c0_4, %c0_5], %4 {strides = array<i32>} : memref<64x512xf32, #tpu.memory_space<vmem>>, vector<1x512xf32>,
    %c1 = arith.constant 1 : index
    %c0_6 = arith.constant 0 : index
    %6 = memref.load %arg0[%c1, %c0_6] : memref<2x8xi32, #tpu.memory_space<smem>>
    %7 = arith.index_cast %6 : i32 to index
    %c0_7 = arith.constant 0 : index
    %8 = vector.load %arg3[%7, %c0_7] : memref<8x512xf32, #tpu.memory_space<vmem>>, vector<1x512xf32>
    %c1_8 = arith.constant 1 : index
    %c0_9 = arith.constant 0 : index
    %9 = vector.load %arg10[%c1_8, %c0_9] : memref<64x512xf32, #tpu.memory_space<vmem>>, vector<1x512xf32>
    tpu.vector_store %arg10[%c1_8, %c0_9], %8 {strides = array<i32>} : memref<64x512xf32, #tpu.memory_space<vmem>>, vector<1x512xf32>,
    %c0_10 = arith.constant 0 : index
    %c1_11 = arith.constant 1 : index
    %10 = memref.load %arg0[%c0_10, %c1_11] : memref<2x8xi32, #tpu.memory_space<smem>>
    %11 = arith.index_cast %10 : i32 to index
    %c0_12 = arith.constant 0 : index
    %12 = vector.load %arg3[%11, %c0_12] : memref<8x512xf32, #tpu.memory_space<vmem>>, vector<1x512xf32>
    %c8 = arith.constant 8 : index
    %c0_13 = arith.constant 0 : index
    %13 = vector.load %arg10[%c8, %c0_13] : memref<64x512xf32, #tpu.memory_space<vmem>>, vector<1x512xf32>
    tpu.vector_store %arg10[%c8, %c0_13], %12 {strides = array<i32>} : memref<64x512xf32, #tpu.memory_space<vmem>>, vector<1x512xf32>,
    %c1_14 = arith.constant 1 : index
    %c1_15 = arith.constant 1 : index
    %14 = memref.load %arg0[%c1_14, %c1_15] : memref<2x8xi32, #tpu.memory_space<smem>>
    %15 = arith.index_cast %14 : i32 to index
    %c0_16 = arith.constant 0 : index
    %16 = vector.load %arg3[%15, %c0_16] : memref<8x512xf32, #tpu.memory_space<vmem>>, vector<1x512xf32>
    %c9 = arith.constant 9 : index
    %c0_17 = arith.constant 0 : index
    %17 = vector.load %arg10[%c9, %c0_17] : memref<64x512xf32, #tpu.memory_space<vmem>>, vector<1x512xf32>
    tpu.vector_store %arg10[%c9, %c0_17], %16 {strides = array<i32>} : memref<64x512xf32, #tpu.memory_space<vmem>>, vector<1x512xf32>,
    %c0_18 = arith.constant 0 : index
    %c2 = arith.constant 2 : index
    %18 = memref.load %arg0[%c0_18, %c2] : memref<2x8xi32, #tpu.memory_space<smem>>
    %19 = arith.index_cast %18 : i32 to index
    %c0_19 = arith.constant 0 : index
    %20 = vector.load %arg3[%19, %c0_19] : memref<8x512xf32, #tpu.memory_space<vmem>>, vector<1x512xf32>
    %c16 = arith.constant 16 : index
    %c0_20 = arith.constant 0 : index
    %21 = vector.load %arg10[%c16, %c0_20] : memref<64x512xf32, #tpu.memory_space<vmem>>, vector<1x512xf32>
    tpu.vector_store %arg10[%c16, %c0_20], %20 {strides = array<i32>} : memref<64x512xf32, #tpu.memory_space<vmem>>, vector<1x512xf32>,
    %c1_21 = arith.constant 1 : index
    %c2_22 = arith.constant 2 : index
    %22 = memref.load %arg0[%c1_21, %c2_22] : memref<2x8xi32, #tpu.memory_space<smem>>
    %23 = arith.index_cast %22 : i32 to index
    %c0_23 = arith.constant 0 : index
    %24 = vector.load %arg3[%23, %c0_23] : memref<8x512xf32, #tpu.memory_space<vmem>>, vector<1x512xf32>
    %c17 = arith.constant 17 : index
    %c0_24 = arith.constant 0 : index
    %25 = vector.load %arg10[%c17, %c0_24] : memref<64x512xf32, #tpu.memory_space<vmem>>, vector<1x512xf32>
    tpu.vector_store %arg10[%c17, %c0_24], %24 {strides = array<i32>} : memref<64x512xf32, #tpu.memory_space<vmem>>, vector<1x512xf32>,
    %c0_25 = arith.constant 0 : index
    %c3 = arith.constant 3 : index
    %26 = memref.load %arg0[%c0_25, %c3] : memref<2x8xi32, #tpu.memory_space<smem>>
    %27 = arith.index_cast %26 : i32 to index
    %c0_26 = arith.constant 0 : index
    %28 = vector.load %arg3[%27, %c0_26] : memref<8x512xf32, #tpu.memory_space<vmem>>, vector<1x512xf32>
    %c24 = arith.constant 24 : index
    %c0_27 = arith.constant 0 : index
    %29 = vector.load %arg10[%c24, %c0_27] : memref<64x512xf32, #tpu.memory_space<vmem>>, vector<1x512xf32>
    tpu.vector_store %arg10[%c24, %c0_27], %28 {strides = array<i32>} : memref<64x512xf32, #tpu.memory_space<vmem>>, vector<1x512xf32>,
    %c1_28 = arith.constant 1 : index
    %c3_29 = arith.constant 3 : index
    %30 = memref.load %arg0[%c1_28, %c3_29] : memref<2x8xi32, #tpu.memory_space<smem>>
    %31 = arith.index_cast %30 : i32 to index
    %c0_30 = arith.constant 0 : index
    %32 = vector.load %arg3[%31, %c0_30] : memref<8x512xf32, #tpu.memory_space<vmem>>, vector<1x512xf32>
    %c25 = arith.constant 25 : index
    %c0_31 = arith.constant 0 : index
    %33 = vector.load %arg10[%c25, %c0_31] : memref<64x512xf32, #tpu.memory_space<vmem>>, vector<1x512xf32>
    tpu.vector_store %arg10[%c25, %c0_31], %32 {strides = array<i32>} : memref<64x512xf32, #tpu.memory_space<vmem>>, vector<1x512xf32>,
    %c0_32 = arith.constant 0 : index
    %c4 = arith.constant 4 : index
    %34 = memref.load %arg0[%c0_32, %c4] : memref<2x8xi32, #tpu.memory_space<smem>>
    %35 = arith.index_cast %34 : i32 to index
    %c0_33 = arith.constant 0 : index
    %36 = vector.load %arg3[%35, %c0_33] : memref<8x512xf32, #tpu.memory_space<vmem>>, vector<1x512xf32>
    %c32 = arith.constant 32 : index
    %c0_34 = arith.constant 0 : index
    %37 = vector.load %arg10[%c32, %c0_34] : memref<64x512xf32, #tpu.memory_space<vmem>>, vector<1x512xf32>
    tpu.vector_store %arg10[%c32, %c0_34], %36 {strides = array<i32>} : memref<64x512xf32, #tpu.memory_space<vmem>>, vector<1x512xf32>,
    %c1_35 = arith.constant 1 : index
    %c4_36 = arith.constant 4 : index
    %38 = memref.load %arg0[%c1_35, %c4_36] : memref<2x8xi32, #tpu.memory_space<smem>>
    %39 = arith.index_cast %38 : i32 to index
    %c0_37 = arith.constant 0 : index
    %40 = vector.load %arg3[%39, %c0_37] : memref<8x512xf32, #tpu.memory_space<vmem>>, vector<1x512xf32>
    %c33 = arith.constant 33 : index
    %c0_38 = arith.constant 0 : index
    %41 = vector.load %arg10[%c33, %c0_38] : memref<64x512xf32, #tpu.memory_space<vmem>>, vector<1x512xf32>
    tpu.vector_store %arg10[%c33, %c0_38], %40 {strides = array<i32>} : memref<64x512xf32, #tpu.memory_space<vmem>>, vector<1x512xf32>,
    %c0_39 = arith.constant 0 : index
    %c5 = arith.constant 5 : index
    %42 = memref.load %arg0[%c0_39, %c5] : memref<2x8xi32, #tpu.memory_space<smem>>
    %43 = arith.index_cast %42 : i32 to index
    %c0_40 = arith.constant 0 : index
    %44 = vector.load %arg3[%43, %c0_40] : memref<8x512xf32, #tpu.memory_space<vmem>>, vector<1x512xf32>
    %c40 = arith.constant 40 : index
    %c0_41 = arith.constant 0 : index
    %45 = vector.load %arg10[%c40, %c0_41] : memref<64x512xf32, #tpu.memory_space<vmem>>, vector<1x512xf32>
    tpu.vector_store %arg10[%c40, %c0_41], %44 {strides = array<i32>} : memref<64x512xf32, #tpu.memory_space<vmem>>, vector<1x512xf32>,
    %c1_42 = arith.constant 1 : index
    %c5_43 = arith.constant 5 : index
    %46 = memref.load %arg0[%c1_42, %c5_43] : memref<2x8xi32, #tpu.memory_space<smem>>
    %47 = arith.index_cast %46 : i32 to index
    %c0_44 = arith.constant 0 : index
    %48 = vector.load %arg3[%47, %c0_44] : memref<8x512xf32, #tpu.memory_space<vmem>>, vector<1x512xf32>
    %c41 = arith.constant 41 : index
    %c0_45 = arith.constant 0 : index
    %49 = vector.load %arg10[%c41, %c0_45] : memref<64x512xf32, #tpu.memory_space<vmem>>, vector<1x512xf32>
    tpu.vector_store %arg10[%c41, %c0_45], %48 {strides = array<i32>} : memref<64x512xf32, #tpu.memory_space<vmem>>, vector<1x512xf32>,
    %c0_46 = arith.constant 0 : index
    %c6 = arith.constant 6 : index
    %50 = memref.load %arg0[%c0_46, %c6] : memref<2x8xi32, #tpu.memory_space<smem>>
    %51 = arith.index_cast %50 : i32 to index
    %c0_47 = arith.constant 0 : index
    %52 = vector.load %arg3[%51, %c0_47] : memref<8x512xf32, #tpu.memory_space<vmem>>, vector<1x512xf32>
    %c48 = arith.constant 48 : index
    %c0_48 = arith.constant 0 : index
    %53 = vector.load %arg10[%c48, %c0_48] : memref<64x512xf32, #tpu.memory_space<vmem>>, vector<1x512xf32>
    tpu.vector_store %arg10[%c48, %c0_48], %52 {strides = array<i32>} : memref<64x512xf32, #tpu.memory_space<vmem>>, vector<1x512xf32>,
    %c1_49 = arith.constant 1 : index
    %c6_50 = arith.constant 6 : index
    %54 = memref.load %arg0[%c1_49, %c6_50] : memref<2x8xi32, #tpu.memory_space<smem>>
    %55 = arith.index_cast %54 : i32 to index
    %c0_51 = arith.constant 0 : index
    %56 = vector.load %arg3[%55, %c0_51] : memref<8x512xf32, #tpu.memory_space<vmem>>, vector<1x512xf32>
    %c49 = arith.constant 49 : index
    %c0_52 = arith.constant 0 : index
    %57 = vector.load %arg10[%c49, %c0_52] : memref<64x512xf32, #tpu.memory_space<vmem>>, vector<1x512xf32>
    tpu.vector_store %arg10[%c49, %c0_52], %56 {strides = array<i32>} : memref<64x512xf32, #tpu.memory_space<vmem>>, vector<1x512xf32>,
    %c0_53 = arith.constant 0 : index
    %c7 = arith.constant 7 : index
    %58 = memref.load %arg0[%c0_53, %c7] : memref<2x8xi32, #tpu.memory_space<smem>>
    %59 = arith.index_cast %58 : i32 to index
    %c0_54 = arith.constant 0 : index
    %60 = vector.load %arg3[%59, %c0_54] : memref<8x512xf32, #tpu.memory_space<vmem>>, vector<1x512xf32>
    %c56 = arith.constant 56 : index
    %c0_55 = arith.constant 0 : index
    %61 = vector.load %arg10[%c56, %c0_55] : memref<64x512xf32, #tpu.memory_space<vmem>>, vector<1x512xf32>
    tpu.vector_store %arg10[%c56, %c0_55], %60 {strides = array<i32>} : memref<64x512xf32, #tpu.memory_space<vmem>>, vector<1x512xf32>,
    %c1_56 = arith.constant 1 : index
    %c7_57 = arith.constant 7 : index
    %62 = memref.load %arg0[%c1_56, %c7_57] : memref<2x8xi32, #tpu.memory_space<smem>>
    %63 = arith.index_cast %62 : i32 to index
    %c0_58 = arith.constant 0 : index
    %64 = vector.load %arg3[%63, %c0_58] : memref<8x512xf32, #tpu.memory_space<vmem>>, vector<1x512xf32>
    %c57 = arith.constant 57 : index
    %c0_59 = arith.constant 0 : index
    %65 = vector.load %arg10[%c57, %c0_59] : memref<64x512xf32, #tpu.memory_space<vmem>>, vector<1x512xf32>
    tpu.vector_store %arg10[%c57, %c0_59], %64 {strides = array<i32>} : memref<64x512xf32, #tpu.memory_space<vmem>>, vector<1x512xf32>,
    %c0_60 = arith.constant 0 : index
    %c0_61 = arith.constant 0 : index
    %66 = vector.load %arg4[%c0_60, %c0_61] : memref<128x512xbf16, #tpu.memory_space<vmem>>, vector<128x512xbf16>
    %c0_62 = arith.constant 0 : index
    %c0_63 = arith.constant 0 : index
    %67 = vector.load %arg1[%c0_62, %c0_63] : memref<8x128xf32, #tpu.memory_space<vmem>>, vector<8x128xf32>
    %c0_64 = arith.constant 0 : index
    %c0_65 = arith.constant 0 : index
    %68 = vector.load %arg2[%c0_64, %c0_65] : memref<8x128xf32, #tpu.memory_space<vmem>>, vector<8x128xf32>
    %c0_66 = arith.constant 0 : index
    %c0_67 = arith.constant 0 : index
    %69 = vector.load %arg10[%c0_66, %c0_67] : memref<64x512xf32, #tpu.memory_space<vmem>>, vector<8x512xf32>
    %70 = arith.truncf %67 : vector<8x128xf32> to vector<8x128xbf16>
    %cst_68 = arith.constant dense<0.000000e+00> : vector<8x512xf32>
    %71 = tpu.matmul %70, %66, %cst_68 {dimension_numbers = #tpu.dot_dimension_numbers<[1], [0], [0], [1], [0, 0, 1, 1], [], []>} : vector<8x128xbf16>, vector<128x512xbf16>, vector<8x512xf32> -> vector<8x512xf32>
    %72 = arith.addf %69, %71 : vector<8x512xf32>
    %73 = vector.extract_strided_slice %72 {offsets = [0, 0], sizes = [8, 128], strides = [1, 1]} : vector<8x512xf32> to vector<8x128xf32>
    %74 = arith.negf %73 : vector<8x128xf32>
    %75 = math.exp %74 : vector<8x128xf32>
    %cst_69 = arith.constant 1.000000e+00 : f32
    %76 = vector.broadcast %cst_69 : f32 to vector<8x128xf32>
    %77 = arith.addf %76, %75 : vector<8x128xf32>
    %78 = arith.divf %76, %77 : vector<8x128xf32>
    %79 = vector.extract_strided_slice %72 {offsets = [0, 128], sizes = [8, 128], strides = [1, 1]} : vector<8x512xf32> to vector<8x128xf32>
    %80 = arith.negf %79 : vector<8x128xf32>
    %81 = math.exp %80 : vector<8x128xf32>
    %cst_70 = arith.constant 1.000000e+00 : f32
    %82 = vector.broadcast %cst_70 : f32 to vector<8x128xf32>
    %83 = arith.addf %82, %81 : vector<8x128xf32>
    %84 = arith.divf %82, %83 : vector<8x128xf32>
    %85 = vector.extract_strided_slice %72 {offsets = [0, 256], sizes = [8, 128], strides = [1, 1]} : vector<8x512xf32> to vector<8x128xf32>
    %86 = math.tanh %85 : vector<8x128xf32>
    %87 = vector.extract_strided_slice %72 {offsets = [0, 384], sizes = [8, 128], strides = [1, 1]} : vector<8x512xf32> to vector<8x128xf32>
    %88 = arith.negf %87 : vector<8x128xf32>
    %89 = math.exp %88 : vector<8x128xf32>
    %cst_71 = arith.constant 1.000000e+00 : f32
    %90 = vector.broadcast %cst_71 : f32 to vector<8x128xf32>
    %91 = arith.addf %90, %89 : vector<8x128xf32>
    %92 = arith.divf %90, %91 : vector<8x128xf32>
    %93 = arith.mulf %84, %68 : vector<8x128xf32>
    %94 = arith.mulf %78, %86 : vector<8x128xf32>
    %95 = arith.addf %93, %94 : vector<8x128xf32>
    %96 = math.tanh %95 : vector<8x128xf32>
    %97 = arith.mulf %92, %96 : vector<8x128xf32>
    %c8_72 = arith.constant 8 : index
    %c0_73 = arith.constant 0 : index
    %98 = vector.load %arg10[%c8_72, %c0_73] : memref<64x512xf32, #tpu.memory_space<vmem>>, vector<8x512xf32>
    %99 = arith.truncf %97 : vector<8x128xf32> to vector<8x128xbf16>
    %cst_74 = arith.constant dense<0.000000e+00> : vector<8x512xf32>
    %100 = tpu.matmul %99, %66, %cst_74 {dimension_numbers = #tpu.dot_dimension_numbers<[1], [0], [0], [1], [0, 0, 1, 1], [], []>} : vector<8x128xbf16>, vector<128x512xbf16>, vector<8x512xf32> -> vector<8x512xf32>
    %101 = arith.addf %98, %100 : vector<8x512xf32>
    %102 = vector.extract_strided_slice %101 {offsets = [0, 0], sizes = [8, 128], strides = [1, 1]} : vector<8x512xf32> to vector<8x128xf32>
    %103 = arith.negf %102 : vector<8x128xf32>
    %104 = math.exp %103 : vector<8x128xf32>
    %cst_75 = arith.constant 1.000000e+00 : f32
    %105 = vector.broadcast %cst_75 : f32 to vector<8x128xf32>
    %106 = arith.addf %105, %104 : vector<8x128xf32>
    %107 = arith.divf %105, %106 : vector<8x128xf32>
    %108 = vector.extract_strided_slice %101 {offsets = [0, 128], sizes = [8, 128], strides = [1, 1]} : vector<8x512xf32> to vector<8x128xf32>
    %109 = arith.negf %108 : vector<8x128xf32>
    %110 = math.exp %109 : vector<8x128xf32>
    %cst_76 = arith.constant 1.000000e+00 : f32
    %111 = vector.broadcast %cst_76 : f32 to vector<8x128xf32>
    %112 = arith.addf %111, %110 : vector<8x128xf32>
    %113 = arith.divf %111, %112 : vector<8x128xf32>
    %114 = vector.extract_strided_slice %101 {offsets = [0, 256], sizes = [8, 128], strides = [1, 1]} : vector<8x512xf32> to vector<8x128xf32>
    %115 = math.tanh %114 : vector<8x128xf32>
    %116 = vector.extract_strided_slice %101 {offsets = [0, 384], sizes = [8, 128], strides = [1, 1]} : vector<8x512xf32> to vector<8x128xf32>
    %117 = arith.negf %116 : vector<8x128xf32>
    %118 = math.exp %117 : vector<8x128xf32>
    %cst_77 = arith.constant 1.000000e+00 : f32
    %119 = vector.broadcast %cst_77 : f32 to vector<8x128xf32>
    %120 = arith.addf %119, %118 : vector<8x128xf32>
    %121 = arith.divf %119, %120 : vector<8x128xf32>
    %122 = arith.mulf %113, %95 : vector<8x128xf32>
    %123 = arith.mulf %107, %115 : vector<8x128xf32>
    %124 = arith.addf %122, %123 : vector<8x128xf32>
    %125 = math.tanh %124 : vector<8x128xf32>
    %126 = arith.mulf %121, %125 : vector<8x128xf32>
    %c16_78 = arith.constant 16 : index
    %c0_79 = arith.constant 0 : index
    %127 = vector.load %arg10[%c16_78, %c0_79] : memref<64x512xf32, #tpu.memory_space<vmem>>, vector<8x512xf32>
    %128 = arith.truncf %126 : vector<8x128xf32> to vector<8x128xbf16>
    %cst_80 = arith.constant dense<0.000000e+00> : vector<8x512xf32>
    %129 = tpu.matmul %128, %66, %cst_80 {dimension_numbers = #tpu.dot_dimension_numbers<[1], [0], [0], [1], [0, 0, 1, 1], [], []>} : vector<8x128xbf16>, vector<128x512xbf16>, vector<8x512xf32> -> vector<8x512xf32>
    %130 = arith.addf %127, %129 : vector<8x512xf32>
    %131 = vector.extract_strided_slice %130 {offsets = [0, 0], sizes = [8, 128], strides = [1, 1]} : vector<8x512xf32> to vector<8x128xf32>
    %132 = arith.negf %131 : vector<8x128xf32>
    %133 = math.exp %132 : vector<8x128xf32>
    %cst_81 = arith.constant 1.000000e+00 : f32
    %134 = vector.broadcast %cst_81 : f32 to vector<8x128xf32>
    %135 = arith.addf %134, %133 : vector<8x128xf32>
    %136 = arith.divf %134, %135 : vector<8x128xf32>
    %137 = vector.extract_strided_slice %130 {offsets = [0, 128], sizes = [8, 128], strides = [1, 1]} : vector<8x512xf32> to vector<8x128xf32>
    %138 = arith.negf %137 : vector<8x128xf32>
    %139 = math.exp %138 : vector<8x128xf32>
    %cst_82 = arith.constant 1.000000e+00 : f32
    %140 = vector.broadcast %cst_82 : f32 to vector<8x128xf32>
    %141 = arith.addf %140, %139 : vector<8x128xf32>
    %142 = arith.divf %140, %141 : vector<8x128xf32>
    %143 = vector.extract_strided_slice %130 {offsets = [0, 256], sizes = [8, 128], strides = [1, 1]} : vector<8x512xf32> to vector<8x128xf32>
    %144 = math.tanh %143 : vector<8x128xf32>
    %145 = vector.extract_strided_slice %130 {offsets = [0, 384], sizes = [8, 128], strides = [1, 1]} : vector<8x512xf32> to vector<8x128xf32>
    %146 = arith.negf %145 : vector<8x128xf32>
    %147 = math.exp %146 : vector<8x128xf32>
    %cst_83 = arith.constant 1.000000e+00 : f32
    %148 = vector.broadcast %cst_83 : f32 to vector<8x128xf32>
    %149 = arith.addf %148, %147 : vector<8x128xf32>
    %150 = arith.divf %148, %149 : vector<8x128xf32>
    %151 = arith.mulf %142, %124 : vector<8x128xf32>
    %152 = arith.mulf %136, %144 : vector<8x128xf32>
    %153 = arith.addf %151, %152 : vector<8x128xf32>
    %154 = math.tanh %153 : vector<8x128xf32>
    %155 = arith.mulf %150, %154 : vector<8x128xf32>
    %c24_84 = arith.constant 24 : index
    %c0_85 = arith.constant 0 : index
    %156 = vector.load %arg10[%c24_84, %c0_85] : memref<64x512xf32, #tpu.memory_space<vmem>>, vector<8x512xf32>
    %157 = arith.truncf %155 : vector<8x128xf32> to vector<8x128xbf16>
    %cst_86 = arith.constant dense<0.000000e+00> : vector<8x512xf32>
    %158 = tpu.matmul %157, %66, %cst_86 {dimension_numbers = #tpu.dot_dimension_numbers<[1], [0], [0], [1], [0, 0, 1, 1], [], []>} : vector<8x128xbf16>, vector<128x512xbf16>, vector<8x512xf32> -> vector<8x512xf32>
    %159 = arith.addf %156, %158 : vector<8x512xf32>
    %160 = vector.extract_strided_slice %159 {offsets = [0, 0], sizes = [8, 128], strides = [1, 1]} : vector<8x512xf32> to vector<8x128xf32>
    %161 = arith.negf %160 : vector<8x128xf32>
    %162 = math.exp %161 : vector<8x128xf32>
    %cst_87 = arith.constant 1.000000e+00 : f32
    %163 = vector.broadcast %cst_87 : f32 to vector<8x128xf32>
    %164 = arith.addf %163, %162 : vector<8x128xf32>
    %165 = arith.divf %163, %164 : vector<8x128xf32>
    %166 = vector.extract_strided_slice %159 {offsets = [0, 128], sizes = [8, 128], strides = [1, 1]} : vector<8x512xf32> to vector<8x128xf32>
    %167 = arith.negf %166 : vector<8x128xf32>
    %168 = math.exp %167 : vector<8x128xf32>
    %cst_88 = arith.constant 1.000000e+00 : f32
    %169 = vector.broadcast %cst_88 : f32 to vector<8x128xf32>
    %170 = arith.addf %169, %168 : vector<8x128xf32>
    %171 = arith.divf %169, %170 : vector<8x128xf32>
    %172 = vector.extract_strided_slice %159 {offsets = [0, 256], sizes = [8, 128], strides = [1, 1]} : vector<8x512xf32> to vector<8x128xf32>
    %173 = math.tanh %172 : vector<8x128xf32>
    %174 = vector.extract_strided_slice %159 {offsets = [0, 384], sizes = [8, 128], strides = [1, 1]} : vector<8x512xf32> to vector<8x128xf32>
    %175 = arith.negf %174 : vector<8x128xf32>
    %176 = math.exp %175 : vector<8x128xf32>
    %cst_89 = arith.constant 1.000000e+00 : f32
    %177 = vector.broadcast %cst_89 : f32 to vector<8x128xf32>
    %178 = arith.addf %177, %176 : vector<8x128xf32>
    %179 = arith.divf %177, %178 : vector<8x128xf32>
    %180 = arith.mulf %171, %153 : vector<8x128xf32>
    %181 = arith.mulf %165, %173 : vector<8x128xf32>
    %182 = arith.addf %180, %181 : vector<8x128xf32>
    %183 = math.tanh %182 : vector<8x128xf32>
    %184 = arith.mulf %179, %183 : vector<8x128xf32>
    %c32_90 = arith.constant 32 : index
    %c0_91 = arith.constant 0 : index
    %185 = vector.load %arg10[%c32_90, %c0_91] : memref<64x512xf32, #tpu.memory_space<vmem>>, vector<8x512xf32>
    %186 = arith.truncf %184 : vector<8x128xf32> to vector<8x128xbf16>
    %cst_92 = arith.constant dense<0.000000e+00> : vector<8x512xf32>
    %187 = tpu.matmul %186, %66, %cst_92 {dimension_numbers = #tpu.dot_dimension_numbers<[1], [0], [0], [1], [0, 0, 1, 1], [], []>} : vector<8x128xbf16>, vector<128x512xbf16>, vector<8x512xf32> -> vector<8x512xf32>
    %188 = arith.addf %185, %187 : vector<8x512xf32>
    %189 = vector.extract_strided_slice %188 {offsets = [0, 0], sizes = [8, 128], strides = [1, 1]} : vector<8x512xf32> to vector<8x128xf32>
    %190 = arith.negf %189 : vector<8x128xf32>
    %191 = math.exp %190 : vector<8x128xf32>
    %cst_93 = arith.constant 1.000000e+00 : f32
    %192 = vector.broadcast %cst_93 : f32 to vector<8x128xf32>
    %193 = arith.addf %192, %191 : vector<8x128xf32>
    %194 = arith.divf %192, %193 : vector<8x128xf32>
    %195 = vector.extract_strided_slice %188 {offsets = [0, 128], sizes = [8, 128], strides = [1, 1]} : vector<8x512xf32> to vector<8x128xf32>
    %196 = arith.negf %195 : vector<8x128xf32>
    %197 = math.exp %196 : vector<8x128xf32>
    %cst_94 = arith.constant 1.000000e+00 : f32
    %198 = vector.broadcast %cst_94 : f32 to vector<8x128xf32>
    %199 = arith.addf %198, %197 : vector<8x128xf32>
    %200 = arith.divf %198, %199 : vector<8x128xf32>
    %201 = vector.extract_strided_slice %188 {offsets = [0, 256], sizes = [8, 128], strides = [1, 1]} : vector<8x512xf32> to vector<8x128xf32>
    %202 = math.tanh %201 : vector<8x128xf32>
    %203 = vector.extract_strided_slice %188 {offsets = [0, 384], sizes = [8, 128], strides = [1, 1]} : vector<8x512xf32> to vector<8x128xf32>
    %204 = arith.negf %203 : vector<8x128xf32>
    %205 = math.exp %204 : vector<8x128xf32>
    %cst_95 = arith.constant 1.000000e+00 : f32
    %206 = vector.broadcast %cst_95 : f32 to vector<8x128xf32>
    %207 = arith.addf %206, %205 : vector<8x128xf32>
    %208 = arith.divf %206, %207 : vector<8x128xf32>
    %209 = arith.mulf %200, %182 : vector<8x128xf32>
    %210 = arith.mulf %194, %202 : vector<8x128xf32>
    %211 = arith.addf %209, %210 : vector<8x128xf32>
    %212 = math.tanh %211 : vector<8x128xf32>
    %213 = arith.mulf %208, %212 : vector<8x128xf32>
    %c40_96 = arith.constant 40 : index
    %c0_97 = arith.constant 0 : index
    %214 = vector.load %arg10[%c40_96, %c0_97] : memref<64x512xf32, #tpu.memory_space<vmem>>, vector<8x512xf32>
    %215 = arith.truncf %213 : vector<8x128xf32> to vector<8x128xbf16>
    %cst_98 = arith.constant dense<0.000000e+00> : vector<8x512xf32>
    %216 = tpu.matmul %215, %66, %cst_98 {dimension_numbers = #tpu.dot_dimension_numbers<[1], [0], [0], [1], [0, 0, 1, 1], [], []>} : vector<8x128xbf16>, vector<128x512xbf16>, vector<8x512xf32> -> vector<8x512xf32>
    %217 = arith.addf %214, %216 : vector<8x512xf32>
    %218 = vector.extract_strided_slice %217 {offsets = [0, 0], sizes = [8, 128], strides = [1, 1]} : vector<8x512xf32> to vector<8x128xf32>
    %219 = arith.negf %218 : vector<8x128xf32>
    %220 = math.exp %219 : vector<8x128xf32>
    %cst_99 = arith.constant 1.000000e+00 : f32
    %221 = vector.broadcast %cst_99 : f32 to vector<8x128xf32>
    %222 = arith.addf %221, %220 : vector<8x128xf32>
    %223 = arith.divf %221, %222 : vector<8x128xf32>
    %224 = vector.extract_strided_slice %217 {offsets = [0, 128], sizes = [8, 128], strides = [1, 1]} : vector<8x512xf32> to vector<8x128xf32>
    %225 = arith.negf %224 : vector<8x128xf32>
    %226 = math.exp %225 : vector<8x128xf32>
    %cst_100 = arith.constant 1.000000e+00 : f32
    %227 = vector.broadcast %cst_100 : f32 to vector<8x128xf32>
    %228 = arith.addf %227, %226 : vector<8x128xf32>
    %229 = arith.divf %227, %228 : vector<8x128xf32>
    %230 = vector.extract_strided_slice %217 {offsets = [0, 256], sizes = [8, 128], strides = [1, 1]} : vector<8x512xf32> to vector<8x128xf32>
    %231 = math.tanh %230 : vector<8x128xf32>
    %232 = vector.extract_strided_slice %217 {offsets = [0, 384], sizes = [8, 128], strides = [1, 1]} : vector<8x512xf32> to vector<8x128xf32>
    %233 = arith.negf %232 : vector<8x128xf32>
    %234 = math.exp %233 : vector<8x128xf32>
    %cst_101 = arith.constant 1.000000e+00 : f32
    %235 = vector.broadcast %cst_101 : f32 to vector<8x128xf32>
    %236 = arith.addf %235, %234 : vector<8x128xf32>
    %237 = arith.divf %235, %236 : vector<8x128xf32>
    %238 = arith.mulf %229, %211 : vector<8x128xf32>
    %239 = arith.mulf %223, %231 : vector<8x128xf32>
    %240 = arith.addf %238, %239 : vector<8x128xf32>
    %241 = math.tanh %240 : vector<8x128xf32>
    %242 = arith.mulf %237, %241 : vector<8x128xf32>
    %c48_102 = arith.constant 48 : index
    %c0_103 = arith.constant 0 : index
    %243 = vector.load %arg10[%c48_102, %c0_103] : memref<64x512xf32, #tpu.memory_space<vmem>>, vector<8x512xf32>
    %244 = arith.truncf %242 : vector<8x128xf32> to vector<8x128xbf16>
    %cst_104 = arith.constant dense<0.000000e+00> : vector<8x512xf32>
    %245 = tpu.matmul %244, %66, %cst_104 {dimension_numbers = #tpu.dot_dimension_numbers<[1], [0], [0], [1], [0, 0, 1, 1], [], []>} : vector<8x128xbf16>, vector<128x512xbf16>, vector<8x512xf32> -> vector<8x512xf32>
    %246 = arith.addf %243, %245 : vector<8x512xf32>
    %247 = vector.extract_strided_slice %246 {offsets = [0, 0], sizes = [8, 128], strides = [1, 1]} : vector<8x512xf32> to vector<8x128xf32>
    %248 = arith.negf %247 : vector<8x128xf32>
    %249 = math.exp %248 : vector<8x128xf32>
    %cst_105 = arith.constant 1.000000e+00 : f32
    %250 = vector.broadcast %cst_105 : f32 to vector<8x128xf32>
    %251 = arith.addf %250, %249 : vector<8x128xf32>
    %252 = arith.divf %250, %251 : vector<8x128xf32>
    %253 = vector.extract_strided_slice %246 {offsets = [0, 128], sizes = [8, 128], strides = [1, 1]} : vector<8x512xf32> to vector<8x128xf32>
    %254 = arith.negf %253 : vector<8x128xf32>
    %255 = math.exp %254 : vector<8x128xf32>
    %cst_106 = arith.constant 1.000000e+00 : f32
    %256 = vector.broadcast %cst_106 : f32 to vector<8x128xf32>
    %257 = arith.addf %256, %255 : vector<8x128xf32>
    %258 = arith.divf %256, %257 : vector<8x128xf32>
    %259 = vector.extract_strided_slice %246 {offsets = [0, 256], sizes = [8, 128], strides = [1, 1]} : vector<8x512xf32> to vector<8x128xf32>
    %260 = math.tanh %259 : vector<8x128xf32>
    %261 = vector.extract_strided_slice %246 {offsets = [0, 384], sizes = [8, 128], strides = [1, 1]} : vector<8x512xf32> to vector<8x128xf32>
    %262 = arith.negf %261 : vector<8x128xf32>
    %263 = math.exp %262 : vector<8x128xf32>
    %cst_107 = arith.constant 1.000000e+00 : f32
    %264 = vector.broadcast %cst_107 : f32 to vector<8x128xf32>
    %265 = arith.addf %264, %263 : vector<8x128xf32>
    %266 = arith.divf %264, %265 : vector<8x128xf32>
    %267 = arith.mulf %258, %240 : vector<8x128xf32>
    %268 = arith.mulf %252, %260 : vector<8x128xf32>
    %269 = arith.addf %267, %268 : vector<8x128xf32>
    %270 = math.tanh %269 : vector<8x128xf32>
    %271 = arith.mulf %266, %270 : vector<8x128xf32>
    %c56_108 = arith.constant 56 : index
    %c0_109 = arith.constant 0 : index
    %272 = vector.load %arg10[%c56_108, %c0_109] : memref<64x512xf32, #tpu.memory_space<vmem>>, vector<8x512xf32>
    %273 = arith.truncf %271 : vector<8x128xf32> to vector<8x128xbf16>
    %cst_110 = arith.constant dense<0.000000e+00> : vector<8x512xf32>
    %274 = tpu.matmul %273, %66, %cst_110 {dimension_numbers = #tpu.dot_dimension_numbers<[1], [0], [0], [1], [0, 0, 1, 1], [], []>} : vector<8x128xbf16>, vector<128x512xbf16>, vector<8x512xf32> -> vector<8x512xf32>
    %275 = arith.addf %272, %274 : vector<8x512xf32>
    %276 = vector.extract_strided_slice %275 {offsets = [0, 0], sizes = [8, 128], strides = [1, 1]} : vector<8x512xf32> to vector<8x128xf32>
    %277 = arith.negf %276 : vector<8x128xf32>
    %278 = math.exp %277 : vector<8x128xf32>
    %cst_111 = arith.constant 1.000000e+00 : f32
    %279 = vector.broadcast %cst_111 : f32 to vector<8x128xf32>
    %280 = arith.addf %279, %278 : vector<8x128xf32>
    %281 = arith.divf %279, %280 : vector<8x128xf32>
    %282 = vector.extract_strided_slice %275 {offsets = [0, 128], sizes = [8, 128], strides = [1, 1]} : vector<8x512xf32> to vector<8x128xf32>
    %283 = arith.negf %282 : vector<8x128xf32>
    %284 = math.exp %283 : vector<8x128xf32>
    %cst_112 = arith.constant 1.000000e+00 : f32
    %285 = vector.broadcast %cst_112 : f32 to vector<8x128xf32>
    %286 = arith.addf %285, %284 : vector<8x128xf32>
    %287 = arith.divf %285, %286 : vector<8x128xf32>
    %288 = vector.extract_strided_slice %275 {offsets = [0, 256], sizes = [8, 128], strides = [1, 1]} : vector<8x512xf32> to vector<8x128xf32>
    %289 = math.tanh %288 : vector<8x128xf32>
    %290 = vector.extract_strided_slice %275 {offsets = [0, 384], sizes = [8, 128], strides = [1, 1]} : vector<8x512xf32> to vector<8x128xf32>
    %291 = arith.negf %290 : vector<8x128xf32>
    %292 = math.exp %291 : vector<8x128xf32>
    %cst_113 = arith.constant 1.000000e+00 : f32
    %293 = vector.broadcast %cst_113 : f32 to vector<8x128xf32>
    %294 = arith.addf %293, %292 : vector<8x128xf32>
    %295 = arith.divf %293, %294 : vector<8x128xf32>
    %296 = arith.mulf %287, %269 : vector<8x128xf32>
    %297 = arith.mulf %281, %289 : vector<8x128xf32>
    %298 = arith.addf %296, %297 : vector<8x128xf32>
    %299 = math.tanh %298 : vector<8x128xf32>
    %300 = arith.mulf %295, %299 : vector<8x128xf32>
    %c0_114 = arith.constant 0 : index
    %c0_115 = arith.constant 0 : index
    %301 = vector.load %arg8[%c0_114, %c0_115] : memref<8x128xf32, #tpu.memory_space<vmem>>, vector<8x128xf32>
    tpu.vector_store %arg8[%c0_114, %c0_115], %300 {strides = array<i32>} : memref<8x128xf32, #tpu.memory_space<vmem>>, vector<8x128xf32>,
    %c0_116 = arith.constant 0 : index
    %c0_117 = arith.constant 0 : index
    %302 = vector.load %arg9[%c0_116, %c0_117] : memref<8x128xf32, #tpu.memory_space<vmem>>, vector<8x128xf32>
    tpu.vector_store %arg9[%c0_116, %c0_117], %298 {strides = array<i32>} : memref<8x128xf32, #tpu.memory_space<vmem>>, vector<8x128xf32>,
    %303 = arith.truncf %300 : vector<8x128xf32> to vector<8x128xbf16>
    %c0_118 = arith.constant 0 : index
    %c0_119 = arith.constant 0 : index
    %304 = vector.load %arg5[%c0_118, %c0_119] : memref<128x128xbf16, #tpu.memory_space<vmem>>, vector<128x128xbf16>
    %cst_120 = arith.constant dense<0.000000e+00> : vector<8x128xf32>
    %305 = tpu.matmul %303, %304, %cst_120 {dimension_numbers = #tpu.dot_dimension_numbers<[1], [0], [0], [1], [0, 0, 1, 1], [], []>} : vector<8x128xbf16>, vector<128x128xbf16>, vector<8x128xf32> -> vector<8x128xf32>
    %c0_121 = arith.constant 0 : index
    %c0_122 = arith.constant 0 : index
    %306 = vector.load %arg6[%c0_121, %c0_122] : memref<1x128xf32, #tpu.memory_space<vmem>>, vector<1x128xf32>
    %307 = vector.broadcast %306 : vector<1x128xf32> to vector<8x128xf32>
    %308 = arith.addf %305, %307 : vector<8x128xf32>
    %c0_123 = arith.constant 0 : index
    %c0_124 = arith.constant 0 : index
    %309 = vector.load %arg7[%c0_123, %c0_124] : memref<8x128xf32, #tpu.memory_space<vmem>>, vector<8x128xf32>
    tpu.vector_store %arg7[%c0_123, %c0_124], %308 {strides = array<i32>} : memref<8x128xf32, #tpu.memory_space<vmem>>, vector<8x128xf32>,
    return
  }
}

</mosaic_0001>

<bundles_post_ra>
// kernel: lstm_model_forward.1
= control target key start
LH: loop header
LB: loop body
LE: loop exit
PB: predicated region body
PF: predicated region fallthrough
CT: control target
= control target key end

     0   :  { %15 = vsyncpa [#allocation5], 0  ;;  %s2696_s0 = inlined_call_operand.vmem [shape: s32[2,8], index: 0, kind: input, shape index: {}]   ;;  %s2697_s1 = inlined_call_operand.vmem [shape: f32[8,128], index: 1, kind: input, shape index: {}, may-alias: {1,8}]   ;;  %s2698_s2 = inlined_call_operand.vmem [shape: f32[8,128], index: 2, kind: input, shape index: {}, may-alias: {2,9}]   ;;  %s2699_s3 = inlined_call_operand.hbm [shape: f32[8,512], index: 3, kind: input, shape index: {}]   ;;  %s2700_s4 = inlined_call_operand.hbm [shape: bf16[128,512], index: 4, kind: input, shape index: {}]   ;;  %s2701_s5 = inlined_call_operand.hbm [shape: bf16[128,128], index: 5, kind: input, shape index: {}]   ;;  %s2702_s6 = inlined_call_operand.vmem [shape: f32[1,128], index: 6, kind: input, shape index: {}]   ;;  %s2703_s7 = inlined_call_operand.vmem [shape: f32[8,128], index: 7, kind: output, shape index: {0}]   ;;  %s2704_s8 = inlined_call_operand.vmem [shape: f32[8,128], index: 8, kind: output, shape index: {1}, may-alias: {1,8}]   ;;  %s2705_s9 = inlined_call_operand.vmem [shape: f32[8,128], index: 9, kind: output, shape index: {2}, may-alias: {2,9}]  }
   0x1   :  { %16 = vsyncpa [#allocation4], 0 }
   0x2   :  { %17 = vsyncpa [#allocation8], 0  ;;  %s46_s11 = sshll.u32 %s2700_s4, 4  ;;  %s2179_s12 = smov [#allocation7]   ;;  %s47_s11 = int_to_ptr.hbm [resolvable:$true] %s46_s11 }
   0x3   :  { %s48_s13 = sshll.u32 %s2179_s12, 4  ;;  %s23_s16 = sshll.u32 %s2696_s0, 4  ;;  %s49_s13 = int_to_ptr.vmem [resolvable:$true] %s48_s13  ;;  %s24_s16 = int_to_ptr.vmem [resolvable:$true] %s23_s16 }
   0x4   :  { %s2180_s17 = smov 256   ;;  %s2181_s18 = smov 16  }
   0x5   :  { %54 = dma.hbm_to_vmem [thread:$0]  %s47_s11, 4096, %s49_s13, [#allocation8], %s2180_s17, %s2180_s17, %s2181_s18  }
   0x6   :  { %s2182_s19 = smov [#allocation3]   ;;  %s36_s22 = sshll.u32 %s2699_s3, 4  ;;  %s37_s22 = int_to_ptr.hbm [resolvable:$true] %s36_s22 }
   0x7   :  { %26 = dma.vmem_to_smem %s24_s16, 32, %s2182_s19, [#allocation5]  }
   0x8   :  { %s2183_s4 = smov [#allocation6]   ;;  %s59_s26 = sshll.u32 %s2701_s5, 4  ;;  %s60_s26 = int_to_ptr.hbm [resolvable:$true] %s59_s26 }
   0x9   :  { %s38_s23 = sshll.u32 %s2183_s4, 4  ;;  %s2184_s0 = smov [#allocation9]   ;;  %s39_s23 = int_to_ptr.vmem [resolvable:$true] %s38_s23 }
   0xa   :  { %41 = dma.hbm_to_vmem [thread:$0]  %s37_s22, 512, %s39_s23, [#allocation4]  }
   0xb   :  { %s61_s27 = sshll.u32 %s2184_s0, 4  ;;  %s2185_s28 = smov 64   ;;  %s62_s27 = int_to_ptr.vmem [resolvable:$true] %s61_s27 }
   0xc   :  { %s2186_s29 = smov 4  }
   0xd   :  { %67 = dma.hbm_to_vmem [thread:$0]  %s60_s26, 1024, %s62_s27, [#allocation8], %s2185_s28, %s2185_s28, %s2186_s29  }
   0xe   :  { %2173 = dma.done.wait [#allocation5], 32  }
   0xf   :  { %2174 = vsyncadd [#allocation5], 4294967264 }
  0x10   :  { %2175 = dma.done.wait [#allocation4], 512  }
  0x11   :  { %2176 = vsyncadd [#allocation4], 4294966784 }
  0x12   :  { %2177 = dma.done.wait [#allocation8], 5120  }
  0x13   :  { %2178 = vsyncadd [#allocation8], 4294962176 }
  0x14   :  { %86 = sfence }
  0x15   :  { %v1825_v0 = vld [vmem:[#allocation7 + $0xe0] sm:$0xf]  ;;  %v1941_v1 = vld [vmem:[#allocation7 + $0xec] sm:$0xf0]  ;;  %v1939_v2 = vld [vmem:[#allocation7 + $0xe4] sm:$0xf] }
  0x16   :  { %v2250_v3 = vor.u32 %v1941_v1, %v1825_v0  ;;  %v1827_v4 = vld [vmem:[#allocation7 + $0xf0] sm:$0xf0]  ;;  %v1940_v5 = vld [vmem:[#allocation7 + $0xec] sm:$0xf]  ;;  %v1835_v6 = vld [vmem:[#allocation7 + $0xf8] sm:$0xf0] }
  0x17   :  { %v2252_v7 = vor.u32 %v1939_v2, %v1827_v4  ;;  %v2254_v8 = vor.u32 %v1940_v5, %v1835_v6  ;;  %v1809_v9 = vld [vmem:[#allocation7 + $0xc0] sm:$0xf]  ;;  %v1937_v10 = vld [vmem:[#allocation7 + $0xcc] sm:$0xf0]  ;;  %v1935_v11 = vld [vmem:[#allocation7 + $0xc4] sm:$0xf] }
  0x18   :  { %529 = vmatpush.bf16.msra.mxu0 %v2250_v3  ;;  %v2257_v12 = vor.u32 %v1937_v10, %v1809_v9  ;;  %v1811_v13 = vld [vmem:[#allocation7 + $0xd0] sm:$0xf0]  ;;  %v1936_v14 = vld [vmem:[#allocation7 + $0xcc] sm:$0xf]  ;;  %v1819_v15 = vld [vmem:[#allocation7 + $0xd8] sm:$0xf0] }
  0x19   :  { %542 = vmatpush.bf16.msra.mxu1 %v2252_v7  ;;  %568 = vmatpush.bf16.msra.mxu3 %v2254_v8  ;;  %v2261_v16 = vor.u32 %v1935_v11, %v1811_v13  ;;  %v2263_v17 = vor.u32 %v1936_v14, %v1819_v15  ;;  %v1833_v18 = vld [vmem:[#allocation7 + $0xe8] sm:$0xf]  ;;  %v1942_v19 = vld [vmem:[#allocation7 + $0xf4] sm:$0xf0]  ;;  %v1793_v20 = vld [vmem:[#allocation7 + $0xa0] sm:$0xf] }
  0x1a   :  { %v2265_v21 = vor.u32 %v1942_v19, %v1833_v18  ;;  %v1933_v22 = vld [vmem:[#allocation7 + $0xac] sm:$0xf0]  ;;  %v1931_v23 = vld [vmem:[#allocation7 + $0xa4] sm:$0xf]  ;;  %v1795_v24 = vld [vmem:[#allocation7 + $0xb0] sm:$0xf0] }
  0x1b   :  { %v1932_v25 = vld [vmem:[#allocation7 + $0xac] sm:$0xf]  ;;  %v1803_v26 = vld [vmem:[#allocation7 + $0xb8] sm:$0xf0]  ;;  %v1817_v27 = vld [vmem:[#allocation7 + $0xc8] sm:$0xf]  ;;  %v2269_v28 = vor.u32 %v1933_v22, %v1793_v20  ;;  %v2273_v32 = vor.u32 %v1931_v23, %v1795_v24 }
  0x1c   :  { %530 = vmatpush.bf16.msra.mxu0 %v2257_v12  ;;  %555 = vmatpush.bf16.msra.mxu2 %v2265_v21  ;;  %v1938_v29 = vld [vmem:[#allocation7 + $0xd4] sm:$0xf0]  ;;  %v1777_v30 = vld [vmem:[#allocation7 + $0x80] sm:$0xf]  ;;  %v1929_v31 = vld [vmem:[#allocation7 + $0x8c] sm:$0xf0]  ;;  %v2275_v33 = vor.u32 %v1932_v25, %v1803_v26 }
  0x1d   :  { %543 = vmatpush.bf16.msra.mxu1 %v2261_v16  ;;  %569 = vmatpush.bf16.msra.mxu3 %v2263_v17  ;;  %v2277_v34 = vor.u32 %v1938_v29, %v1817_v27  ;;  %v1927_v35 = vld [vmem:[#allocation7 + $0x84] sm:$0xf]  ;;  %v1779_v36 = vld [vmem:[#allocation7 + $0x90] sm:$0xf0]  ;;  %v1928_v37 = vld [vmem:[#allocation7 + $0x8c] sm:$0xf]  ;;  %v2281_v41 = vor.u32 %v1929_v31, %v1777_v30 }
  0x1e   :  { %v1787_v38 = vld [vmem:[#allocation7 + $0x98] sm:$0xf0]  ;;  %v1801_v39 = vld [vmem:[#allocation7 + $0xa8] sm:$0xf]  ;;  %v1934_v40 = vld [vmem:[#allocation7 + $0xb4] sm:$0xf0]  ;;  %v2287_v45 = vor.u32 %v1927_v35, %v1779_v36 }
  0x1f   :  { %v2283_v42 = vor.u32 %v1934_v40, %v1801_v39  ;;  %v1761_v43 = vld [vmem:[#allocation7 + $0x60] sm:$0xf]  ;;  %v1925_v44 = vld [vmem:[#allocation7 + $0x6c] sm:$0xf0]  ;;  %v2289_v46 = vor.u32 %v1928_v37, %v1787_v38  ;;  %v1923_v47 = vld [vmem:[#allocation7 + $0x64] sm:$0xf]  ;;  %v129_v37 = vlaneseq }
  0x20   :  { %531 = vmatpush.bf16.msra.mxu0 %v2269_v28  ;;  %556 = vmatpush.bf16.msra.mxu2 %v2277_v34  ;;  %v1785_v48 = vld [vmem:[#allocation7 + $0x88] sm:$0xf]  ;;  %v1930_v49 = vld [vmem:[#allocation7 + $0x94] sm:$0xf0]  ;;  %v1763_v50 = vld [vmem:[#allocation7 + $0x70] sm:$0xf0]  ;;  %v2293_v53 = vor.u32 %v1925_v44, %v1761_v43 }
  0x21   :  { %544 = vmatpush.bf16.msra.mxu1 %v2273_v32  ;;  %570 = vmatpush.bf16.msra.mxu3 %v2275_v33  ;;  %v1924_v51 = vld [vmem:[#allocation7 + $0x6c] sm:$0xf]  ;;  %v1771_v52 = vld [vmem:[#allocation7 + $0x78] sm:$0xf0]  ;;  %v2295_v54 = vor.u32 %v1930_v49, %v1785_v48  ;;  %v1745_v55 = vld [vmem:[#allocation7 + $0x40] sm:$0xf]  ;;  %v2299_v57 = vor.u32 %v1923_v47, %v1763_v50 }
  0x22   :  { %v1921_v56 = vld [vmem:[#allocation7 + $0x4c] sm:$0xf0]  ;;  %v2301_v58 = vor.u32 %v1924_v51, %v1771_v52  ;;  %v1919_v59 = vld [vmem:[#allocation7 + $0x44] sm:$0xf]  ;;  %v1769_v60 = vld [vmem:[#allocation7 + $0x68] sm:$0xf] }
  0x23   :  { %v1926_v61 = vld [vmem:[#allocation7 + $0x74] sm:$0xf0]  ;;  %v1747_v62 = vld [vmem:[#allocation7 + $0x50] sm:$0xf0]  ;;  %v1920_v63 = vld [vmem:[#allocation7 + $0x4c] sm:$0xf]  ;;  %v2305_v2 = vor.u32 %v1921_v56, %v1745_v55 }
  0x24   :  { %532 = vmatpush.bf16.msra.mxu0 %v2281_v41  ;;  %557 = vmatpush.bf16.msra.mxu2 %v2283_v42  ;;  %v1755_v0 = vld [vmem:[#allocation7 + $0x58] sm:$0xf0]  ;;  %v1729_v1 = vld [vmem:[#allocation7 + $0x20] sm:$0xf]  ;;  %v2307_v4 = vor.u32 %v1926_v61, %v1769_v60  ;;  %v1917_v5 = vld [vmem:[#allocation7 + $0x2c] sm:$0xf0]  ;;  %v2311_v10 = vor.u32 %v1919_v59, %v1747_v62 }
  0x25   :  { %545 = vmatpush.bf16.msra.mxu1 %v2287_v45  ;;  %571 = vmatpush.bf16.msra.mxu3 %v2289_v46  ;;  %v1915_v6 = vld [vmem:[#allocation7 + $0x24] sm:$0xf]  ;;  %v1731_v9 = vld [vmem:[#allocation7 + $0x30] sm:$0xf0]  ;;  %v2313_v11 = vor.u32 %v1920_v63, %v1755_v0  ;;  %v1753_v13 = vld [vmem:[#allocation7 + $0x48] sm:$0xf]  ;;  %v2321_v23 = vor.u32 %v1917_v5, %v1729_v1 }
  0x26   :  { %v1922_v14 = vld [vmem:[#allocation7 + $0x54] sm:$0xf0]  ;;  %v1916_v15 = vld [vmem:[#allocation7 + $0x2c] sm:$0xf]  ;;  %v1739_v18 = vld [vmem:[#allocation7 + $0x38] sm:$0xf0]  ;;  %v2330_v27 = vor.u32 %v1915_v6, %v1731_v9 }
  0x27   :  { %v2187_v19 = vmov 0.0   ;;  %v1713_v20 = vld [vmem:[#allocation7] sm:$0xf]  ;;  %v1913_v22 = vld [vmem:[#allocation7 + $0xc] sm:$0xf0]  ;;  %s2317_s3 = sld [smem:[#allocation3]]  ;;  %v2323_v24 = vor.u32 %v1922_v14, %v1753_v13  ;;  %v2332_v29 = vor.u32 %v1916_v15, %v1739_v18 }
  0x28   :  { %533 = vmatpush.bf16.msra.mxu0 %v2293_v53  ;;  %558 = vmatpush.bf16.msra.mxu2 %v2295_v54  ;;  %87 = vst [vmem:[#allocation2] sm:$0xff] %v2187_v19  ;;  %v1911_v25 = vld [vmem:[#allocation7 + $0x4] sm:$0xf]  ;;  %v1715_v26 = vld [vmem:[#allocation7 + $0x10] sm:$0xf0]  ;;  %s2326_s5 = sld [smem:[#allocation3 + $0x80]]  ;;  %v2339_v38 = vor.u32 %v1913_v22, %v1713_v20 }
  0x29   :  { %546 = vmatpush.bf16.msra.mxu1 %v2299_v57  ;;  %572 = vmatpush.bf16.msra.mxu3 %v2301_v58  ;;  %88 = vst [vmem:[#allocation2 + $0x8] sm:$0xff] %v2187_v19  ;;  %v1737_v30 = vld [vmem:[#allocation7 + $0x28] sm:$0xf]  ;;  %v1918_v31 = vld [vmem:[#allocation7 + $0x34] sm:$0xf0]  ;;  %v362_v39 = vld [vmem:[%s2697_s1] sm:$0xff]  ;;  %v2349_v43 = vor.u32 %v1911_v25, %v1715_v26 }
  0x2a   :  { %89 = vst [vmem:[#allocation2 + $0x10] sm:$0xff] %v2187_v19  ;;  %v1912_v35 = vld [vmem:[#allocation7 + $0xc] sm:$0xf]  ;;  %v1723_v36 = vld [vmem:[#allocation7 + $0x18] sm:$0xf0]  ;;  %v2344_v40 = vor.u32 %v1918_v31, %v1737_v30  ;;  %v368_v49 = vpack.c.bf16 %v362_v39, %v362_v39  ;;  %vm2358_vm0 = vcmp.lt.s32.totalorder %v129_v37, 512 }
  0x2b   :  { %90 = vst [vmem:[#allocation2 + $0x18] sm:$0xff] %v2187_v19  ;;  %v2351_v44 = vor.u32 %v1912_v35, %v1723_v36  ;;  %v1721_v47 = vld [vmem:[#allocation7 + $0x8] sm:$0xf]  ;;  %v1914_v48 = vld [vmem:[#allocation7 + $0x14] sm:$0xf0]  ;;  %s1669_s20 = sld [smem:[#allocation3 + $0x1]] }
  0x2c   :  { %534 = vmatpush.bf16.msra.mxu0 %v2305_v2  ;;  %559 = vmatpush.bf16.msra.mxu2 %v2307_v4  ;;  %91 = vst [vmem:[#allocation2 + $0x20] sm:$0xff] %v2187_v19  ;;  %v2369_v51 = vor.u32 %v1914_v48, %v1721_v47  ;;  %s2461_s21 = sld [smem:[#allocation3 + $0x81]] }
  0x2d   :  { %547 = vmatpush.bf16.msra.mxu1 %v2311_v10  ;;  %573 = vmatpush.bf16.msra.mxu3 %v2313_v11  ;;  %92 = vst [vmem:[#allocation2 + $0x28] sm:$0xff] %v2187_v19  ;;  %s120_s11 = sshra.s32 %s2317_s3, 3  ;;  %s123_s12 = sand.u32 7, %s2317_s3 }
  0x2e   :  { %93 = vst [vmem:[#allocation2 + $0x30] sm:$0xff] %v2187_v19  ;;  %s1895_s1 = sshll.u32 %s120_s11, 5  ;;  %s136_s13 = sshra.s32 %s2326_s5, 3 }
  0x2f   :  { %94 = vst [vmem:[#allocation2 + $0x38] sm:$0xff] %v2187_v19  ;;  %s126_s14 = sadd.s32 %s1895_s1, %s123_s12  ;;  %s139_s15 = sand.u32 7, %s2326_s5 }
  0x30   :  { %535 = vmatpush.bf16.msra.mxu0 %v2321_v23  ;;  %560 = vmatpush.bf16.msra.mxu2 %v2323_v24  ;;  %95 = vst [vmem:[#allocation2 + $0x40] sm:$0xff] %v2187_v19  ;;  %s1896_s16 = sshll.u32 %s136_s13, 5  ;;  %s127_s17 = scalar_lea.vmem [#allocation6], %s126_s14 }
  0x31   :  { %548 = vmatpush.bf16.msra.mxu1 %v2330_v27  ;;  %574 = vmatpush.bf16.msra.mxu3 %v2332_v29  ;;  %96 = vst [vmem:[#allocation2 + $0x48] sm:$0xff] %v2187_v19  ;;  %v128_v52 = vld [vmem:[%s127_s17] ss:$8 sm:$0xf]  ;;  %s142_s18 = sadd.s32 %s1896_s16, %s139_s15  ;;  %s149_s22 = sshra.s32 %s1669_s20, 3 }
  0x32   :  { %97 = vst [vmem:[#allocation2 + $0x50] sm:$0xff] %v2187_v19  ;;  %s143_s19 = scalar_lea.vmem [#allocation6], %s142_s18  ;;  %s162_s4 = sshra.s32 %s2461_s21, 3 }
  0x33   :  { %98 = vst [vmem:[#allocation2 + $0x58] sm:$0xff] %v2187_v19  ;;  %v144_v55 = vld [vmem:[%s143_s19] ss:$8 sm:$0xf]  ;;  %s152_s23 = sand.u32 7, %s1669_s20  ;;  %s1897_s24 = sshll.u32 %s149_s22, 5 }
  0x34   :  { %536 = vmatpush.bf16.msra.mxu0 %v2339_v38  ;;  %561 = vmatpush.bf16.msra.mxu2 %v2344_v40  ;;  %133 = vst.msk [vmem:[#allocation2] ss:$8 sm:$0xf] %vm2358_vm0, %v128_v52  ;;  %s165_s25 = sand.u32 7, %s2461_s21  ;;  %s1898_s26 = sshll.u32 %s162_s4, 5 }
  0x35   :  { %549 = vmatpush.bf16.msra.mxu1 %v2349_v43  ;;  %575 = vmatpush.bf16.msra.mxu3 %v2351_v44  ;;  %99 = vst [vmem:[#allocation2 + $0x60] sm:$0xff] %v2187_v19  ;;  %s155_s0 = sadd.s32 %s1897_s24, %s152_s23  ;;  %s168_s27 = sadd.s32 %s1898_s26, %s165_s25 }
  0x36   :  { %146 = vst.msk [vmem:[#allocation2 + $0x1] ss:$8 sm:$0xf] %vm2358_vm0, %v144_v55  ;;  %s156_s28 = scalar_lea.vmem [#allocation6], %s155_s0  ;;  %s169_s29 = scalar_lea.vmem [#allocation6], %s168_s27 }
  0x37   :  { %537 = vmatmul.bf16.vlgmr.msra.gmra.mxu0 %v368_v49  ;;  %100 = vst [vmem:[#allocation2 + $0x68] sm:$0xff] %v2187_v19  ;;  %v157_v31 = vld [vmem:[%s156_s28] ss:$8 sm:$0xf]  ;;  %s1678_s30 = sld [smem:[#allocation3 + $0x82]] }
  0x38   :  { %653 = vmatpush.bf16.msrb.mxu0 %v2250_v3  ;;  %550 = vmatmul.bf16.vlgmr.msra.gmra.mxu1 %v368_v49  ;;  %101 = vst [vmem:[#allocation2 + $0x70] sm:$0xff] %v2187_v19  ;;  %v170_v37 = vld [vmem:[%s169_s29] ss:$8 sm:$0xf]  ;;  %s1681_s19 = sld [smem:[#allocation3 + $0x3]] }
  0x39   :  { %666 = vmatpush.bf16.msrb.mxu1 %v2252_v7  ;;  %692 = vmatpush.bf16.msrb.mxu3 %v2254_v8  ;;  %102 = vst [vmem:[#allocation2 + $0x78] sm:$0xff] %v2187_v19  ;;  %s1684_s20 = sld [smem:[#allocation3 + $0x83]] }
  0x3a   :  { %576 = vmatmul.bf16.vlgmr.msra.gmra.mxu3 %v368_v49  ;;  %562 = vmatpush.bf16.msra.mxu2 %v2369_v51  ;;  %103 = vst [vmem:[#allocation2 + $0x80] sm:$0xff] %v2187_v19  ;;  %s1687_s29 = sld [smem:[#allocation3 + $0x4]] }
  0x3b   :  { %104 = vst [vmem:[#allocation2 + $0x88] sm:$0xff] %v2187_v19  ;;  %s1690_s3 = sld [smem:[#allocation3 + $0x84]] }
  0x3c   :  { %654 = vmatpush.bf16.msrb.mxu0 %v2257_v12  ;;  %105 = vst [vmem:[#allocation2 + $0x90] sm:$0xff] %v2187_v19 }
  0x3d   :  { %667 = vmatpush.bf16.msrb.mxu1 %v2261_v16  ;;  %693 = vmatpush.bf16.msrb.mxu3 %v2263_v17  ;;  %106 = vst [vmem:[#allocation2 + $0x98] sm:$0xff] %v2187_v19  ;;  %v364_v56 = vld [vmem:[#allocation2] sm:$0xff]  ;;  %v365_v59 = vld [vmem:[#allocation2 + $0x8] sm:$0xff]  ;;  %v367_v5 = vld [vmem:[#allocation2 + $0x18] sm:$0xff]  ;;  %s188_s11 = sshra.s32 %s1678_s30, 3  ;;  %s191_s13 = sand.u32 7, %s1678_s30 }
  0x3e   :  { %679 = vmatpush.bf16.msrb.mxu2 %v2265_v21  ;;  %107 = vst [vmem:[#allocation2 + $0xa0] sm:$0xff] %v2187_v19  ;;  %v366_v26 = vld [vmem:[#allocation2 + $0x10] sm:$0xff]  ;;  %s1900_s14 = sshll.u32 %s188_s11, 5  ;;  %s201_s21 = sshra.s32 %s1681_s19, 3 }
  0x3f   :  { %563 = vmatmul.bf16.vlgmr.msra.gmra.mxu2 %v368_v49  ;;  %108 = vst [vmem:[#allocation2 + $0xa8] sm:$0xff] %v2187_v19  ;;  %s194_s16 = sadd.s32 %s1900_s14, %s191_s13  ;;  %s214_s22 = sshra.s32 %s1684_s20, 3 }
  0x40   :  { %655 = vmatpush.bf16.msrb.mxu0 %v2269_v28  ;;  %109 = vst [vmem:[#allocation2 + $0xb0] sm:$0xff] %v2187_v19  ;;  %s195_s18 = scalar_lea.vmem [#allocation6], %s194_s16  ;;  %s204_s4 = sand.u32 7, %s1681_s19 }
  0x41   :  { %668 = vmatpush.bf16.msrb.mxu1 %v2273_v32  ;;  %694 = vmatpush.bf16.msrb.mxu3 %v2275_v33  ;;  %110 = vst [vmem:[#allocation2 + $0xb8] sm:$0xff] %v2187_v19  ;;  %s1901_s23 = sshll.u32 %s201_s21, 5  ;;  %s217_s24 = sand.u32 7, %s1684_s20 }
  0x42   :  { %680 = vmatpush.bf16.msrb.mxu2 %v2277_v34  ;;  %111 = vst [vmem:[#allocation2 + $0xc0] sm:$0xff] %v2187_v19  ;;  %s1902_s25 = sshll.u32 %s214_s22, 5  ;;  %s207_s26 = sadd.s32 %s1901_s23, %s204_s4 }
  0x43   :  { %112 = vst [vmem:[#allocation2 + $0xc8] sm:$0xff] %v2187_v19  ;;  %s220_s0 = sadd.s32 %s1902_s25, %s217_s24  ;;  %s208_s27 = scalar_lea.vmem [#allocation6], %s207_s26 }
  0x44   :  { %656 = vmatpush.bf16.msrb.mxu0 %v2281_v41  ;;  %113 = vst [vmem:[#allocation2 + $0xd0] sm:$0xff] %v2187_v19  ;;  %s221_s28 = scalar_lea.vmem [#allocation6], %s220_s0  ;;  %s227_s5 = sshra.s32 %s1687_s29, 3 }
  0x45   :  { %669 = vmatpush.bf16.msrb.mxu1 %v2287_v45  ;;  %695 = vmatpush.bf16.msrb.mxu3 %v2289_v46  ;;  %114 = vst [vmem:[#allocation2 + $0xd8] sm:$0xff] %v2187_v19  ;;  %s230_s30 = sand.u32 7, %s1687_s29  ;;  %s243_s11 = sand.u32 7, %s1690_s3 }
  0x46   :  { %681 = vmatpush.bf16.msrb.mxu2 %v2283_v42  ;;  %115 = vst [vmem:[#allocation2 + $0xe0] sm:$0xff] %v2187_v19  ;;  %s1693_s16 = sld [smem:[#allocation3 + $0x5]] }
  0x47   :  { %116 = vst [vmem:[#allocation2 + $0xe8] sm:$0xff] %v2187_v19  ;;  %s1699_s0 = sld [smem:[#allocation3 + $0x6]] }
  0x48   :  { %657 = vmatpush.bf16.msrb.mxu0 %v2293_v53  ;;  %117 = vst [vmem:[#allocation2 + $0xf0] sm:$0xff] %v2187_v19 }
  0x49   :  { %670 = vmatpush.bf16.msrb.mxu1 %v2299_v57  ;;  %696 = vmatpush.bf16.msrb.mxu3 %v2301_v58  ;;  %118 = vst [vmem:[#allocation2 + $0xf8] sm:$0xff] %v2187_v19 }
  0x4a   :  { %682 = vmatpush.bf16.msrb.mxu2 %v2295_v54  ;;  %159 = vst.msk [vmem:[#allocation2 + $0x20] ss:$8 sm:$0xf] %vm2358_vm0, %v157_v31 }
  0x4b   :  { %172 = vst.msk [vmem:[#allocation2 + $0x21] ss:$8 sm:$0xf] %vm2358_vm0, %v170_v37 }
  0x4c   :  { %658 = vmatpush.bf16.msrb.mxu0 %v2305_v2  ;;  %s256_s20 = sand.u32 7, %s1693_s16 }
  0x4d   :  { %671 = vmatpush.bf16.msrb.mxu1 %v2311_v10  ;;  %697 = vmatpush.bf16.msrb.mxu3 %v2313_v11 }
  0x4e   :  { %683 = vmatpush.bf16.msrb.mxu2 %v2307_v4 }
  0x50   :  { %659 = vmatpush.bf16.msrb.mxu0 %v2321_v23 }
  0x51   :  { %672 = vmatpush.bf16.msrb.mxu1 %v2330_v27  ;;  %698 = vmatpush.bf16.msrb.mxu3 %v2332_v29 }
  0x52   :  { %684 = vmatpush.bf16.msrb.mxu2 %v2323_v24 }
  0x54   :  { %660 = vmatpush.bf16.msrb.mxu0 %v2339_v38 }
  0x55   :  { %673 = vmatpush.bf16.msrb.mxu1 %v2349_v43  ;;  %699 = vmatpush.bf16.msrb.mxu3 %v2351_v44 }
  0x56   :  { %685 = vmatpush.bf16.msrb.mxu2 %v2344_v40 }
  0x58   :  { %777 = vmatpush.bf16.msra.mxu0 %v2250_v3 }
  0x59   :  { %790 = vmatpush.bf16.msra.mxu1 %v2252_v7  ;;  %816 = vmatpush.bf16.msra.mxu3 %v2254_v8 }
  0x5a   :  { %686 = vmatpush.bf16.msrb.mxu2 %v2369_v51 }
  0x5c   :  { %778 = vmatpush.bf16.msra.mxu0 %v2257_v12 }
  0x5d   :  { %791 = vmatpush.bf16.msra.mxu1 %v2261_v16  ;;  %817 = vmatpush.bf16.msra.mxu3 %v2263_v17 }
  0x5e   :  { %803 = vmatpush.bf16.msra.mxu2 %v2265_v21 }
  0x60   :  { %779 = vmatpush.bf16.msra.mxu0 %v2269_v28 }
  0x61   :  { %792 = vmatpush.bf16.msra.mxu1 %v2273_v32  ;;  %818 = vmatpush.bf16.msra.mxu3 %v2275_v33 }
  0x62   :  { %804 = vmatpush.bf16.msra.mxu2 %v2277_v34 }
  0x64   :  { %780 = vmatpush.bf16.msra.mxu0 %v2281_v41 }
  0x65   :  { %793 = vmatpush.bf16.msra.mxu1 %v2287_v45  ;;  %819 = vmatpush.bf16.msra.mxu3 %v2289_v46 }
  0x66   :  { %805 = vmatpush.bf16.msra.mxu2 %v2283_v42 }
  0x68   :  { %781 = vmatpush.bf16.msra.mxu0 %v2293_v53 }
  0x69   :  { %794 = vmatpush.bf16.msra.mxu1 %v2299_v57  ;;  %820 = vmatpush.bf16.msra.mxu3 %v2301_v58 }
  0x6a   :  { %806 = vmatpush.bf16.msra.mxu2 %v2295_v54 }
  0x6c   :  { %782 = vmatpush.bf16.msra.mxu0 %v2305_v2 }
  0x6d   :  { %795 = vmatpush.bf16.msra.mxu1 %v2311_v10  ;;  %821 = vmatpush.bf16.msra.mxu3 %v2313_v11 }
  0x6e   :  { %807 = vmatpush.bf16.msra.mxu2 %v2307_v4 }
  0x70   :  { %783 = vmatpush.bf16.msra.mxu0 %v2321_v23 }
  0x71   :  { %796 = vmatpush.bf16.msra.mxu1 %v2330_v27  ;;  %822 = vmatpush.bf16.msra.mxu3 %v2332_v29 }
  0x72   :  { %808 = vmatpush.bf16.msra.mxu2 %v2323_v24 }
  0x74   :  { %784 = vmatpush.bf16.msra.mxu0 %v2339_v38 }
  0x75   :  { %797 = vmatpush.bf16.msra.mxu1 %v2349_v43  ;;  %823 = vmatpush.bf16.msra.mxu3 %v2351_v44 }
  0x76   :  { %809 = vmatpush.bf16.msra.mxu2 %v2344_v40 }
  0x7a   :  { %810 = vmatpush.bf16.msra.mxu2 %v2369_v51 }
  0xb4   :  { %v538_v60 = vpop.f32.mrf.mxu0 }
  0xb5   :  { %v581_v61 = vadd.f32 %v538_v60, %v364_v56  ;;  %v551_v62 = vpop.f32.mrf.mxu1 }
  0xb6   :  { %v582_v63 = vadd.f32 %v551_v62, %v365_v59 }
  0xb7   :  { %v1839_v0 = vmul.f32 -1.442695, %v581_v61 }
  0xb8   :  { %v1840_v1 = vmul.f32 -1.442695, %v582_v63 }
  0xb9   :  { %1961 = vpow2.f32 %v1839_v0 }
  0xba   :  { %1963 = vpow2.f32 %v1840_v1 }
  0xbc   :  { %v540_v13 = vpop.f32.mrf.mxu0 }
  0xbd   :  { %v577_v6 = vpop.f32.mrf.mxu3  ;;  %v553_v14 = vpop.f32.mrf.mxu1 }
  0xbe   :  { %v584_v9 = vadd.f32 %v577_v6, %v367_v5 }
  0xbf   :  { %v1962_v18 = vpop.eup %1961 }
  0xc0   :  { %v1841_v15 = vmul.f32 -1.442695, %v584_v9  ;;  %v1964_v20 = vpop.eup %1963  ;;  %v588_v22 = vadd.f32 1.0, %v1962_v18 }
  0xc1   :  { %v607_v25 = vadd.f32 1.0, %v1964_v20 }
  0xc2   :  { %v564_v19 = vpop.f32.mrf.mxu2  ;;  %1965 = vpow2.f32 %v1841_v15  ;;  %v600_v60 = vand.u32 2147483648, %v588_v22  ;;  %v598_v63 = vand.u32 2147483647, %v588_v22  ;;  %vm594_vm3 = vweird.f32 %v588_v22 }
  0xc3   :  { %1967 = vrcp.f32 %v588_v22  ;;  %v583_v36 = vadd.f32 %v564_v19, %v366_v26  ;;  %v619_v61 = vand.u32 2147483648, %v607_v25  ;;  %v617_v1 = vand.u32 2147483647, %v607_v25  ;;  %v363_v19 = vld [vmem:[%s2698_s2] sm:$0xff]  ;;  %s1675_s2 = sld [smem:[#allocation3 + $0x2]] }
  0xc4   :  { %1969 = vrcp.f32 %v607_v25  ;;  %vm613_vm4 = vweird.f32 %v607_v25  ;;  %v601_v14 = vor.u32 1.1754944e-38, %v600_v60  ;;  %vm599_vm7 = vcmp.eq.f32.partialorder %v598_v63, 8.507059e+37 }
  0xc5   :  { %v579_v30 = vpop.f32.mrf.mxu3  ;;  %v620_v18 = vor.u32 1.1754944e-38, %v619_v61  ;;  %vm618_vm8 = vcmp.eq.f32.partialorder %v617_v1, 8.507059e+37 }
  0xc8   :  { %v1966_v35 = vpop.eup %1965 }
  0xc9   :  { %v627_v39 = vadd.f32 1.0, %v1966_v35  ;;  %v1968_v48 = vpop.eup %1967  ;;  %s175_s10 = sshra.s32 %s1675_s2, 3  ;;  %s178_s12 = sand.u32 7, %s1675_s2 }
  0xca   :  { %v566_v47 = vpop.f32.mrf.mxu2  ;;  %v1970_v49 = vpop.eup %1969  ;;  %v590_v52 = vmul.f32 %v1968_v48, %v588_v22  ;;  %vm595_vm1 = vweird.f32 %v1968_v48  ;;  %s1899_s1 = sshll.u32 %s175_s10, 5  ;;  %s240_s2 = sshra.s32 %s1690_s3, 3 }
  0xcb   :  { %1971 = vrcp.f32 %v627_v39  ;;  %v609_v55 = vmul.f32 %v1970_v49, %v607_v25  ;;  %vm614_vm2 = vweird.f32 %v1970_v49  ;;  %vm596_vm5 = vmor %vm594_vm3, %vm595_vm1  ;;  %vm633_vm10 = vweird.f32 %v627_v39  ;;  %s181_s15 = sadd.s32 %s1899_s1, %s178_s12  ;;  %s1903_s10 = sshll.u32 %s227_s5, 5 }
  0xcc   :  { %1973 = vtanh.f32 %v583_v36  ;;  %v591_v56 = vsub.f32 1.0, %v590_v52  ;;  %vm615_vm6 = vmor %vm613_vm4, %vm614_vm2  ;;  %v639_v52 = vand.u32 2147483648, %v627_v39  ;;  %s182_s17 = scalar_lea.vmem [#allocation6], %s181_s15  ;;  %s1904_s12 = sshll.u32 %s240_s2, 5 }
  0xcd   :  { %v610_v59 = vsub.f32 1.0, %v609_v55  ;;  %v637_v55 = vand.u32 2147483647, %v627_v39  ;;  %s233_s1 = sadd.s32 %s1903_s10, %s230_s30  ;;  %s246_s13 = sadd.s32 %s1904_s12, %s243_s11 }
  0xce   :  { %v592_v62 = vmul.f32 %v1968_v48, %v591_v56  ;;  %v640_v56 = vor.u32 1.1754944e-38, %v639_v52  ;;  %v650_v52 = vld [vmem:[#allocation2 + $0x30] sm:$0xff]  ;;  %s234_s14 = scalar_lea.vmem [#allocation6], %s233_s1  ;;  %s247_s15 = scalar_lea.vmem [#allocation6], %s246_s13 }
  0xcf   :  { %v611_v0 = vmul.f32 %v1970_v49, %v610_v59  ;;  %vm638_vm12 = vcmp.eq.f32.partialorder %v637_v55, 8.507059e+37  ;;  %s282_s3 = sand.u32 7, %s1699_s0  ;;  %s1705_s13 = sld [smem:[#allocation3 + $0x7]] }
  0xd0   :  { %v593_v6 = vadd.f32 %v1968_v48, %v592_v62  ;;  %v649_v62 = vld [vmem:[#allocation2 + $0x28] sm:$0xff] }
  0xd1   :  { %v1972_v5 = vpop.eup %1971  ;;  %v612_v15 = vadd.f32 %v1970_v49, %v611_v0 }
  0xd2   :  { %v1974_v9 = vpop.eup %1973  ;;  %v629_v13 = vmul.f32 %v1972_v5, %v627_v39  ;;  %v597_v20 = vsel %vm596_vm5, %v1968_v48, %v593_v6  ;;  %vm634_vm9 = vweird.f32 %v1972_v5  ;;  %v648_v39 = vld [vmem:[#allocation2 + $0x20] sm:$0xff] }
  0xd3   :  { %v602_v30 = vsel %vm599_vm7, %v601_v14, %v597_v20  ;;  %v616_v31 = vsel %vm615_vm6, %v1970_v49, %v612_v15  ;;  %vm635_vm11 = vmor %vm633_vm10, %vm634_vm9 }
  0xd4   :  { %v630_v26 = vsub.f32 1.0, %v629_v13  ;;  %v621_v35 = vsel %vm618_vm8, %v620_v18, %v616_v31  ;;  %v644_v22 = vmul.f32 %v1974_v9, %v602_v30  ;;  %v651_v13 = vld [vmem:[#allocation2 + $0x38] sm:$0xff] }
  0xd5   :  { %v643_v36 = vmul.f32 %v621_v35, %v363_v19 }
  0xd6   :  { %v631_v25 = vmul.f32 %v1972_v5, %v630_v26 }
  0xd7   :  { %v2472_v37 = vadd.f32 %v644_v22, %v643_v36 }
  0xd8   :  { %v632_v47 = vadd.f32 %v1972_v5, %v631_v25 }
  0xd9   :  { %1975 = vtanh.f32 %v2472_v37 }
  0xda   :  { %v636_v48 = vsel %vm635_vm11, %v1972_v5, %v632_v47  ;;  %v183_v47 = vld [vmem:[%s182_s17] ss:$8 sm:$0xf]  ;;  %s1696_s17 = sld [smem:[#allocation3 + $0x85]] }
  0xdb   :  { %v641_v49 = vsel %vm638_vm12, %v640_v56, %v636_v48  ;;  %185 = vst.msk [vmem:[#allocation2 + $0x40] ss:$8 sm:$0xf] %vm2358_vm0, %v183_v47  ;;  %v196_v48 = vld [vmem:[%s195_s18] ss:$8 sm:$0xf] }
  0xdc   :  { %198 = vst.msk [vmem:[#allocation2 + $0x41] ss:$8 sm:$0xf] %vm2358_vm0, %v196_v48  ;;  %s253_s18 = sshra.s32 %s1693_s16, 3 }
  0xdd   :  { %s1905_s21 = sshll.u32 %s253_s18, 5 }
  0xde   :  { %s259_s23 = sadd.s32 %s1905_s21, %s256_s20 }
  0xdf   :  { %v1976_v59 = vpop.eup %1975  ;;  %s260_s25 = scalar_lea.vmem [#allocation6], %s259_s23 }
  0xe0   :  { %v647_v60 = vmul.f32 %v1976_v59, %v641_v49  ;;  %s266_s19 = sshra.s32 %s1696_s17, 3  ;;  %s269_s22 = sand.u32 7, %s1696_s17 }
  0xe1   :  { %s1906_s4 = sshll.u32 %s266_s19, 5  ;;  %s308_s17 = sand.u32 7, %s1705_s13 }
  0xe2   :  { %v652_v61 = vpack.c.bf16 %v647_v60, %v647_v60  ;;  %s272_s24 = sadd.s32 %s1906_s4, %s269_s22 }
  0xe3   :  { %s273_s26 = scalar_lea.vmem [#allocation6], %s272_s24 }
  0xe4   :  { %661 = vmatmul.bf16.vlgmr.msrb.gmra.mxu0 %v652_v61  ;;  %674 = vmatmul.bf16.vlgmr.msrb.gmra.mxu1 %v652_v61 }
  0xe5   :  { %687 = vmatmul.bf16.vlgmr.msrb.gmra.mxu2 %v652_v61  ;;  %700 = vmatmul.bf16.vlgmr.msrb.gmra.mxu3 %v652_v61 }
  0xe6   :  { %901 = vmatpush.bf16.msrb.mxu0 %v2250_v3  ;;  %914 = vmatpush.bf16.msrb.mxu1 %v2252_v7 }
  0xe7   :  { %927 = vmatpush.bf16.msrb.mxu2 %v2265_v21  ;;  %940 = vmatpush.bf16.msrb.mxu3 %v2254_v8 }
  0xea   :  { %902 = vmatpush.bf16.msrb.mxu0 %v2257_v12  ;;  %915 = vmatpush.bf16.msrb.mxu1 %v2261_v16 }
  0xeb   :  { %928 = vmatpush.bf16.msrb.mxu2 %v2277_v34  ;;  %941 = vmatpush.bf16.msrb.mxu3 %v2263_v17 }
  0xee   :  { %903 = vmatpush.bf16.msrb.mxu0 %v2269_v28  ;;  %916 = vmatpush.bf16.msrb.mxu1 %v2273_v32 }
  0xef   :  { %929 = vmatpush.bf16.msrb.mxu2 %v2283_v42  ;;  %942 = vmatpush.bf16.msrb.mxu3 %v2275_v33 }
  0xf2   :  { %904 = vmatpush.bf16.msrb.mxu0 %v2281_v41  ;;  %917 = vmatpush.bf16.msrb.mxu1 %v2287_v45 }
  0xf3   :  { %930 = vmatpush.bf16.msrb.mxu2 %v2295_v54  ;;  %943 = vmatpush.bf16.msrb.mxu3 %v2289_v46 }
  0xf6   :  { %905 = vmatpush.bf16.msrb.mxu0 %v2293_v53  ;;  %918 = vmatpush.bf16.msrb.mxu1 %v2299_v57 }
  0xf7   :  { %931 = vmatpush.bf16.msrb.mxu2 %v2307_v4  ;;  %944 = vmatpush.bf16.msrb.mxu3 %v2301_v58 }
  0xfa   :  { %906 = vmatpush.bf16.msrb.mxu0 %v2305_v2  ;;  %919 = vmatpush.bf16.msrb.mxu1 %v2311_v10 }
  0xfb   :  { %932 = vmatpush.bf16.msrb.mxu2 %v2323_v24  ;;  %945 = vmatpush.bf16.msrb.mxu3 %v2313_v11 }
  0xfe   :  { %907 = vmatpush.bf16.msrb.mxu0 %v2321_v23  ;;  %920 = vmatpush.bf16.msrb.mxu1 %v2330_v27 }
  0xff   :  { %933 = vmatpush.bf16.msrb.mxu2 %v2344_v40  ;;  %946 = vmatpush.bf16.msrb.mxu3 %v2332_v29 }
 0x102   :  { %908 = vmatpush.bf16.msrb.mxu0 %v2339_v38  ;;  %921 = vmatpush.bf16.msrb.mxu1 %v2349_v43 }
 0x103   :  { %934 = vmatpush.bf16.msrb.mxu2 %v2369_v51  ;;  %947 = vmatpush.bf16.msrb.mxu3 %v2351_v44 }
 0x161   :  { %v662_v63 = vpop.f32.mrf.mxu0  ;;  %v675_v0 = vpop.f32.mrf.mxu1 }
 0x162   :  { %v705_v1 = vadd.f32 %v662_v63, %v648_v39  ;;  %v706_v5 = vadd.f32 %v675_v0, %v649_v62 }
 0x164   :  { %v1842_v6 = vmul.f32 -1.442695, %v705_v1  ;;  %v1843_v9 = vmul.f32 -1.442695, %v706_v5 }
 0x166   :  { %1977 = vpow2.f32 %v1842_v6 }
 0x167   :  { %1979 = vpow2.f32 %v1843_v9 }
 0x168   :  { %v688_v14 = vpop.f32.mrf.mxu2  ;;  %v701_v15 = vpop.f32.mrf.mxu3 }
 0x169   :  { %v708_v18 = vadd.f32 %v701_v15, %v651_v13  ;;  %v664_v19 = vpop.f32.mrf.mxu0  ;;  %v677_v20 = vpop.f32.mrf.mxu1  ;;  %v707_v49 = vadd.f32 %v688_v14, %v650_v52 }
 0x16b   :  { %v1844_v26 = vmul.f32 -1.442695, %v708_v18 }
 0x16c   :  { %v1978_v30 = vpop.eup %1977 }
 0x16d   :  { %v1980_v31 = vpop.eup %1979  ;;  %v712_v35 = vadd.f32 1.0, %v1978_v30  ;;  %1981 = vpow2.f32 %v1844_v26 }
 0x16e   :  { %v731_v22 = vadd.f32 1.0, %v1980_v31 }
 0x16f   :  { %1983 = vrcp.f32 %v712_v35  ;;  %v724_v0 = vand.u32 2147483648, %v712_v35  ;;  %v722_v6 = vand.u32 2147483647, %v712_v35  ;;  %vm718_vm15 = vweird.f32 %v712_v35 }
 0x170   :  { %1985 = vrcp.f32 %v731_v22  ;;  %v690_v36 = vpop.f32.mrf.mxu2  ;;  %v703_v25 = vpop.f32.mrf.mxu3  ;;  %v743_v1 = vand.u32 2147483648, %v731_v22  ;;  %v741_v13 = vand.u32 2147483647, %v731_v22  ;;  %vm737_vm1 = vweird.f32 %v731_v22 }
 0x171   :  { %v725_v14 = vor.u32 1.1754944e-38, %v724_v0  ;;  %vm723_vm4 = vcmp.eq.f32.partialorder %v722_v6, 8.507059e+37 }
 0x172   :  { %v744_v26 = vor.u32 1.1754944e-38, %v743_v1  ;;  %vm742_vm5 = vcmp.eq.f32.partialorder %v741_v13, 8.507059e+37 }
 0x173   :  { %v1982_v55 = vpop.eup %1981 }
 0x174   :  { %v751_v56 = vadd.f32 1.0, %v1982_v55 }
 0x175   :  { %v1984_v59 = vpop.eup %1983 }
 0x176   :  { %v1986_v60 = vpop.eup %1985  ;;  %v714_v61 = vmul.f32 %v1984_v59, %v712_v35  ;;  %1987 = vrcp.f32 %v751_v56  ;;  %vm719_vm13 = vweird.f32 %v1984_v59  ;;  %vm757_vm7 = vweird.f32 %v751_v56 }
 0x177   :  { %v733_v39 = vmul.f32 %v1986_v60, %v731_v22  ;;  %1989 = vtanh.f32 %v707_v49  ;;  %vm738_vm14 = vweird.f32 %v1986_v60  ;;  %vm720_vm2 = vmor %vm718_vm15, %vm719_vm13 }
 0x178   :  { %v715_v62 = vsub.f32 1.0, %v714_v61  ;;  %vm739_vm3 = vmor %vm737_vm1, %vm738_vm14  ;;  %v763_v61 = vand.u32 2147483648, %v751_v56 }
 0x179   :  { %v734_v63 = vsub.f32 1.0, %v733_v39 }
 0x17a   :  { %v716_v5 = vmul.f32 %v1984_v59, %v715_v62  ;;  %v764_v62 = vor.u32 1.1754944e-38, %v763_v61  ;;  %v774_v61 = vld [vmem:[#allocation2 + $0x50] sm:$0xff] }
 0x17b   :  { %v735_v9 = vmul.f32 %v1986_v60, %v734_v63 }
 0x17c   :  { %v1988_v15 = vpop.eup %1987  ;;  %v717_v18 = vadd.f32 %v1984_v59, %v716_v5 }
 0x17d   :  { %v736_v19 = vadd.f32 %v1986_v60, %v735_v9  ;;  %v753_v20 = vmul.f32 %v1988_v15, %v751_v56  ;;  %v1990_v31 = vpop.eup %1989  ;;  %vm758_vm6 = vweird.f32 %v1988_v15 }
 0x17e   :  { %v721_v30 = vsel %vm720_vm2, %v1984_v59, %v717_v18  ;;  %v761_v59 = vand.u32 2147483647, %v751_v56  ;;  %vm759_vm8 = vmor %vm757_vm7, %vm758_vm6  ;;  %v773_v56 = vld [vmem:[#allocation2 + $0x48] sm:$0xff] }
 0x17f   :  { %v726_v36 = vsel %vm723_vm4, %v725_v14, %v721_v30  ;;  %v740_v25 = vsel %vm739_vm3, %v1986_v60, %v736_v19  ;;  %v754_v47 = vsub.f32 1.0, %v753_v20  ;;  %v775_v14 = vld [vmem:[#allocation2 + $0x58] sm:$0xff] }
 0x180   :  { %v745_v52 = vsel %vm742_vm5, %v744_v26, %v740_v25  ;;  %v768_v55 = vmul.f32 %v1990_v31, %v726_v36  ;;  %vm762_vm9 = vcmp.eq.f32.partialorder %v761_v59, 8.507059e+37 }
 0x181   :  { %v767_v48 = vmul.f32 %v745_v52, %v2472_v37  ;;  %v755_v49 = vmul.f32 %v1988_v15, %v754_v47  ;;  %v772_v37 = vld [vmem:[#allocation2 + $0x40] sm:$0xff] }
 0x183   :  { %v2512_v35 = vadd.f32 %v768_v55, %v767_v48  ;;  %v756_v22 = vadd.f32 %v1988_v15, %v755_v49 }
 0x185   :  { %1991 = vtanh.f32 %v2512_v35  ;;  %v760_v39 = vsel %vm759_vm8, %v1988_v15, %v756_v22  ;;  %v209_v22 = vld [vmem:[%s208_s27] ss:$8 sm:$0xf]  ;;  %s1702_s27 = sld [smem:[#allocation3 + $0x86]] }
 0x186   :  { %v765_v63 = vsel %vm762_vm9, %v764_v62, %v760_v39  ;;  %211 = vst.msk [vmem:[#allocation2 + $0x60] ss:$8 sm:$0xf] %vm2358_vm0, %v209_v22  ;;  %v222_v39 = vld [vmem:[%s221_s28] ss:$8 sm:$0xf] }
 0x187   :  { %224 = vst.msk [vmem:[#allocation2 + $0x61] ss:$8 sm:$0xf] %vm2358_vm0, %v222_v39  ;;  %s279_s28 = sshra.s32 %s1699_s0, 3 }
 0x188   :  { %s1907_s5 = sshll.u32 %s279_s28, 5 }
 0x189   :  { %s285_s10 = sadd.s32 %s1907_s5, %s282_s3 }
 0x18a   :  { %s286_s12 = scalar_lea.vmem [#allocation6], %s285_s10 }
 0x18b   :  { %v1992_v60 = vpop.eup %1991  ;;  %s292_s29 = sshra.s32 %s1702_s27, 3  ;;  %s295_s2 = sand.u32 7, %s1702_s27 }
 0x18c   :  { %v771_v0 = vmul.f32 %v1992_v60, %v765_v63  ;;  %s1908_s30 = sshll.u32 %s292_s29, 5 }
 0x18d   :  { %s298_s11 = sadd.s32 %s1908_s30, %s295_s2 }
 0x18e   :  { %v776_v1 = vpack.c.bf16 %v771_v0, %v771_v0  ;;  %s299_s1 = scalar_lea.vmem [#allocation6], %s298_s11 }
 0x190   :  { %785 = vmatmul.bf16.vlgmr.msra.gmra.mxu0 %v776_v1  ;;  %798 = vmatmul.bf16.vlgmr.msra.gmra.mxu1 %v776_v1 }
 0x191   :  { %811 = vmatmul.bf16.vlgmr.msra.gmra.mxu2 %v776_v1  ;;  %824 = vmatmul.bf16.vlgmr.msra.gmra.mxu3 %v776_v1 }
 0x192   :  { %1025 = vmatpush.bf16.msra.mxu0 %v2250_v3  ;;  %1038 = vmatpush.bf16.msra.mxu1 %v2252_v7 }
 0x193   :  { %1051 = vmatpush.bf16.msra.mxu2 %v2265_v21  ;;  %1064 = vmatpush.bf16.msra.mxu3 %v2254_v8 }
 0x196   :  { %1026 = vmatpush.bf16.msra.mxu0 %v2257_v12  ;;  %1039 = vmatpush.bf16.msra.mxu1 %v2261_v16 }
 0x197   :  { %1052 = vmatpush.bf16.msra.mxu2 %v2277_v34  ;;  %1065 = vmatpush.bf16.msra.mxu3 %v2263_v17 }
 0x19a   :  { %1027 = vmatpush.bf16.msra.mxu0 %v2269_v28  ;;  %1040 = vmatpush.bf16.msra.mxu1 %v2273_v32 }
 0x19b   :  { %1053 = vmatpush.bf16.msra.mxu2 %v2283_v42  ;;  %1066 = vmatpush.bf16.msra.mxu3 %v2275_v33 }
 0x19e   :  { %1028 = vmatpush.bf16.msra.mxu0 %v2281_v41  ;;  %1041 = vmatpush.bf16.msra.mxu1 %v2287_v45 }
 0x19f   :  { %1054 = vmatpush.bf16.msra.mxu2 %v2295_v54  ;;  %1067 = vmatpush.bf16.msra.mxu3 %v2289_v46 }
 0x1a2   :  { %1029 = vmatpush.bf16.msra.mxu0 %v2293_v53  ;;  %1042 = vmatpush.bf16.msra.mxu1 %v2299_v57 }
 0x1a3   :  { %1055 = vmatpush.bf16.msra.mxu2 %v2307_v4  ;;  %1068 = vmatpush.bf16.msra.mxu3 %v2301_v58 }
 0x1a6   :  { %1030 = vmatpush.bf16.msra.mxu0 %v2305_v2  ;;  %1043 = vmatpush.bf16.msra.mxu1 %v2311_v10 }
 0x1a7   :  { %1056 = vmatpush.bf16.msra.mxu2 %v2323_v24  ;;  %1069 = vmatpush.bf16.msra.mxu3 %v2313_v11 }
 0x1aa   :  { %1031 = vmatpush.bf16.msra.mxu0 %v2321_v23  ;;  %1044 = vmatpush.bf16.msra.mxu1 %v2330_v27 }
 0x1ab   :  { %1057 = vmatpush.bf16.msra.mxu2 %v2344_v40  ;;  %1070 = vmatpush.bf16.msra.mxu3 %v2332_v29 }
 0x1ae   :  { %1032 = vmatpush.bf16.msra.mxu0 %v2339_v38  ;;  %1045 = vmatpush.bf16.msra.mxu1 %v2349_v43 }
 0x1af   :  { %1058 = vmatpush.bf16.msra.mxu2 %v2369_v51  ;;  %1071 = vmatpush.bf16.msra.mxu3 %v2351_v44 }
 0x20d   :  { %v786_v5 = vpop.f32.mrf.mxu0  ;;  %v799_v6 = vpop.f32.mrf.mxu1 }
 0x20e   :  { %v829_v9 = vadd.f32 %v786_v5, %v772_v37  ;;  %v830_v13 = vadd.f32 %v799_v6, %v773_v56 }
 0x210   :  { %v1845_v15 = vmul.f32 -1.442695, %v829_v9  ;;  %v1846_v18 = vmul.f32 -1.442695, %v830_v13 }
 0x212   :  { %1993 = vpow2.f32 %v1845_v15 }
 0x213   :  { %1995 = vpow2.f32 %v1846_v18 }
 0x214   :  { %v812_v19 = vpop.f32.mrf.mxu2  ;;  %v825_v20 = vpop.f32.mrf.mxu3 }
 0x215   :  { %v832_v26 = vadd.f32 %v825_v20, %v775_v14  ;;  %v788_v30 = vpop.f32.mrf.mxu0  ;;  %v801_v31 = vpop.f32.mrf.mxu1  ;;  %v831_v63 = vadd.f32 %v812_v19, %v774_v61 }
 0x217   :  { %v1847_v36 = vmul.f32 -1.442695, %v832_v26 }
 0x218   :  { %v1994_v25 = vpop.eup %1993 }
 0x219   :  { %v1996_v47 = vpop.eup %1995  ;;  %v836_v52 = vadd.f32 1.0, %v1994_v25  ;;  %1997 = vpow2.f32 %v1847_v36 }
 0x21a   :  { %v855_v55 = vadd.f32 1.0, %v1996_v47 }
 0x21b   :  { %1999 = vrcp.f32 %v836_v52  ;;  %v848_v6 = vand.u32 2147483648, %v836_v52  ;;  %v846_v15 = vand.u32 2147483647, %v836_v52  ;;  %vm842_vm12 = vweird.f32 %v836_v52 }
 0x21c   :  { %2001 = vrcp.f32 %v855_v55  ;;  %v814_v48 = vpop.f32.mrf.mxu2  ;;  %v827_v49 = vpop.f32.mrf.mxu3  ;;  %v867_v9 = vand.u32 2147483648, %v855_v55  ;;  %v865_v14 = vand.u32 2147483647, %v855_v55  ;;  %vm861_vm13 = vweird.f32 %v855_v55 }
 0x21d   :  { %v849_v19 = vor.u32 1.1754944e-38, %v848_v6  ;;  %vm847_vm1 = vcmp.eq.f32.partialorder %v846_v15, 8.507059e+37 }
 0x21e   :  { %v868_v36 = vor.u32 1.1754944e-38, %v867_v9  ;;  %vm866_vm2 = vcmp.eq.f32.partialorder %v865_v14, 8.507059e+37 }
 0x21f   :  { %v1998_v59 = vpop.eup %1997 }
 0x220   :  { %v875_v62 = vadd.f32 1.0, %v1998_v59 }
 0x221   :  { %v2000_v60 = vpop.eup %1999 }
 0x222   :  { %v2002_v0 = vpop.eup %2001  ;;  %v838_v1 = vmul.f32 %v2000_v60, %v836_v52  ;;  %2003 = vrcp.f32 %v875_v62  ;;  %vm843_vm10 = vweird.f32 %v2000_v60  ;;  %vm881_vm4 = vweird.f32 %v875_v62 }
 0x223   :  { %v857_v37 = vmul.f32 %v2002_v0, %v855_v55  ;;  %2005 = vtanh.f32 %v831_v63  ;;  %vm862_vm11 = vweird.f32 %v2002_v0  ;;  %vm844_vm14 = vmor %vm842_vm12, %vm843_vm10 }
 0x224   :  { %v839_v56 = vsub.f32 1.0, %v838_v1  ;;  %vm863_vm15 = vmor %vm861_vm13, %vm862_vm11  ;;  %v887_v1 = vand.u32 2147483648, %v875_v62 }
 0x225   :  { %v858_v5 = vsub.f32 1.0, %v857_v37 }
 0x226   :  { %v840_v13 = vmul.f32 %v2000_v60, %v839_v56  ;;  %v888_v56 = vor.u32 1.1754944e-38, %v887_v1  ;;  %v898_v1 = vld [vmem:[#allocation2 + $0x70] sm:$0xff] }
 0x227   :  { %v859_v18 = vmul.f32 %v2002_v0, %v858_v5 }
 0x228   :  { %v2004_v20 = vpop.eup %2003  ;;  %v841_v26 = vadd.f32 %v2000_v60, %v840_v13 }
 0x229   :  { %v860_v30 = vadd.f32 %v2002_v0, %v859_v18  ;;  %v877_v31 = vmul.f32 %v2004_v20, %v875_v62  ;;  %v2006_v47 = vpop.eup %2005  ;;  %vm882_vm3 = vweird.f32 %v2004_v20 }
 0x22a   :  { %v845_v25 = vsel %vm844_vm14, %v2000_v60, %v841_v26  ;;  %v885_v60 = vand.u32 2147483647, %v875_v62  ;;  %vm883_vm5 = vmor %vm881_vm4, %vm882_vm3  ;;  %v897_v62 = vld [vmem:[#allocation2 + $0x68] sm:$0xff] }
 0x22b   :  { %v850_v48 = vsel %vm847_vm1, %v849_v19, %v845_v25  ;;  %v864_v49 = vsel %vm863_vm15, %v2002_v0, %v860_v30  ;;  %v878_v22 = vsub.f32 1.0, %v877_v31  ;;  %v899_v19 = vld [vmem:[#allocation2 + $0x78] sm:$0xff] }
 0x22c   :  { %v869_v61 = vsel %vm866_vm2, %v868_v36, %v864_v49  ;;  %v892_v59 = vmul.f32 %v2006_v47, %v850_v48  ;;  %vm886_vm6 = vcmp.eq.f32.partialorder %v885_v60, 8.507059e+37 }
 0x22d   :  { %v891_v39 = vmul.f32 %v869_v61, %v2512_v35  ;;  %v879_v63 = vmul.f32 %v2004_v20, %v878_v22  ;;  %v896_v35 = vld [vmem:[#allocation2 + $0x60] sm:$0xff] }
 0x22f   :  { %v2552_v52 = vadd.f32 %v892_v59, %v891_v39  ;;  %v880_v55 = vadd.f32 %v2004_v20, %v879_v63 }
 0x231   :  { %2007 = vtanh.f32 %v2552_v52  ;;  %v884_v37 = vsel %vm883_vm5, %v2004_v20, %v880_v55  ;;  %v235_v55 = vld [vmem:[%s234_s14] ss:$8 sm:$0xf]  ;;  %s1708_s14 = sld [smem:[#allocation3 + $0x87]] }
 0x232   :  { %v889_v5 = vsel %vm886_vm6, %v888_v56, %v884_v37  ;;  %237 = vst.msk [vmem:[#allocation2 + $0x80] ss:$8 sm:$0xf] %vm2358_vm0, %v235_v55  ;;  %v248_v37 = vld [vmem:[%s247_s15] ss:$8 sm:$0xf] }
 0x233   :  { %250 = vst.msk [vmem:[#allocation2 + $0x81] ss:$8 sm:$0xf] %vm2358_vm0, %v248_v37  ;;  %s305_s15 = sshra.s32 %s1705_s13, 3 }
 0x234   :  { %s1909_s18 = sshll.u32 %s305_s15, 5 }
 0x235   :  { %s311_s21 = sadd.s32 %s1909_s18, %s308_s17 }
 0x236   :  { %s312_s4 = scalar_lea.vmem [#allocation6], %s311_s21 }
 0x237   :  { %v2008_v0 = vpop.eup %2007  ;;  %s318_s16 = sshra.s32 %s1708_s14, 3  ;;  %s321_s19 = sand.u32 7, %s1708_s14 }
 0x238   :  { %v895_v6 = vmul.f32 %v2008_v0, %v889_v5  ;;  %s1910_s20 = sshll.u32 %s318_s16, 5 }
 0x239   :  { %s324_s22 = sadd.s32 %s1910_s20, %s321_s19 }
 0x23a   :  { %v900_v9 = vpack.c.bf16 %v895_v6, %v895_v6  ;;  %s325_s23 = scalar_lea.vmem [#allocation6], %s324_s22 }
 0x23c   :  { %909 = vmatmul.bf16.vlgmr.msrb.gmra.mxu0 %v900_v9  ;;  %922 = vmatmul.bf16.vlgmr.msrb.gmra.mxu1 %v900_v9 }
 0x23d   :  { %935 = vmatmul.bf16.vlgmr.msrb.gmra.mxu2 %v900_v9  ;;  %948 = vmatmul.bf16.vlgmr.msrb.gmra.mxu3 %v900_v9 }
 0x23e   :  { %1149 = vmatpush.bf16.msrb.mxu0 %v2250_v3  ;;  %1162 = vmatpush.bf16.msrb.mxu1 %v2252_v7 }
 0x23f   :  { %1175 = vmatpush.bf16.msrb.mxu2 %v2265_v21  ;;  %1188 = vmatpush.bf16.msrb.mxu3 %v2254_v8 }
 0x242   :  { %1150 = vmatpush.bf16.msrb.mxu0 %v2257_v12  ;;  %1163 = vmatpush.bf16.msrb.mxu1 %v2261_v16 }
 0x243   :  { %1176 = vmatpush.bf16.msrb.mxu2 %v2277_v34  ;;  %1189 = vmatpush.bf16.msrb.mxu3 %v2263_v17 }
 0x246   :  { %1151 = vmatpush.bf16.msrb.mxu0 %v2269_v28  ;;  %1164 = vmatpush.bf16.msrb.mxu1 %v2273_v32 }
 0x247   :  { %1177 = vmatpush.bf16.msrb.mxu2 %v2283_v42  ;;  %1190 = vmatpush.bf16.msrb.mxu3 %v2275_v33 }
 0x24a   :  { %1152 = vmatpush.bf16.msrb.mxu0 %v2281_v41  ;;  %1165 = vmatpush.bf16.msrb.mxu1 %v2287_v45 }
 0x24b   :  { %1178 = vmatpush.bf16.msrb.mxu2 %v2295_v54  ;;  %1191 = vmatpush.bf16.msrb.mxu3 %v2289_v46 }
 0x24e   :  { %1153 = vmatpush.bf16.msrb.mxu0 %v2293_v53  ;;  %1166 = vmatpush.bf16.msrb.mxu1 %v2299_v57 }
 0x24f   :  { %1179 = vmatpush.bf16.msrb.mxu2 %v2307_v4  ;;  %1192 = vmatpush.bf16.msrb.mxu3 %v2301_v58 }
 0x252   :  { %1154 = vmatpush.bf16.msrb.mxu0 %v2305_v2  ;;  %1167 = vmatpush.bf16.msrb.mxu1 %v2311_v10 }
 0x253   :  { %1180 = vmatpush.bf16.msrb.mxu2 %v2323_v24  ;;  %1193 = vmatpush.bf16.msrb.mxu3 %v2313_v11 }
 0x256   :  { %1155 = vmatpush.bf16.msrb.mxu0 %v2321_v23  ;;  %1168 = vmatpush.bf16.msrb.mxu1 %v2330_v27 }
 0x257   :  { %1181 = vmatpush.bf16.msrb.mxu2 %v2344_v40  ;;  %1194 = vmatpush.bf16.msrb.mxu3 %v2332_v29 }
 0x25a   :  { %1156 = vmatpush.bf16.msrb.mxu0 %v2339_v38  ;;  %1169 = vmatpush.bf16.msrb.mxu1 %v2349_v43 }
 0x25b   :  { %1182 = vmatpush.bf16.msrb.mxu2 %v2369_v51  ;;  %1195 = vmatpush.bf16.msrb.mxu3 %v2351_v44 }
 0x2b9   :  { %v910_v13 = vpop.f32.mrf.mxu0  ;;  %v923_v15 = vpop.f32.mrf.mxu1 }
 0x2ba   :  { %v953_v18 = vadd.f32 %v910_v13, %v896_v35  ;;  %v954_v14 = vadd.f32 %v923_v15, %v897_v62 }
 0x2bc   :  { %v1848_v20 = vmul.f32 -1.442695, %v953_v18  ;;  %v1849_v26 = vmul.f32 -1.442695, %v954_v14 }
 0x2be   :  { %2009 = vpow2.f32 %v1848_v20 }
 0x2bf   :  { %2011 = vpow2.f32 %v1849_v26 }
 0x2c0   :  { %v936_v30 = vpop.f32.mrf.mxu2  ;;  %v949_v31 = vpop.f32.mrf.mxu3 }
 0x2c1   :  { %v956_v36 = vadd.f32 %v949_v31, %v899_v19  ;;  %v912_v25 = vpop.f32.mrf.mxu0  ;;  %v925_v47 = vpop.f32.mrf.mxu1  ;;  %v955_v5 = vadd.f32 %v936_v30, %v898_v1 }
 0x2c3   :  { %v1850_v48 = vmul.f32 -1.442695, %v956_v36 }
 0x2c4   :  { %v2010_v49 = vpop.eup %2009 }
 0x2c5   :  { %v2012_v22 = vpop.eup %2011  ;;  %v960_v61 = vadd.f32 1.0, %v2010_v49  ;;  %2013 = vpow2.f32 %v1850_v48 }
 0x2c6   :  { %v979_v59 = vadd.f32 1.0, %v2012_v22 }
 0x2c7   :  { %2015 = vrcp.f32 %v960_v61  ;;  %v972_v15 = vand.u32 2147483648, %v960_v61  ;;  %v970_v20 = vand.u32 2147483647, %v960_v61  ;;  %vm966_vm9 = vweird.f32 %v960_v61 }
 0x2c8   :  { %2017 = vrcp.f32 %v979_v59  ;;  %v938_v39 = vpop.f32.mrf.mxu2  ;;  %v951_v63 = vpop.f32.mrf.mxu3  ;;  %v991_v18 = vand.u32 2147483648, %v979_v59  ;;  %v989_v19 = vand.u32 2147483647, %v979_v59  ;;  %vm985_vm10 = vweird.f32 %v979_v59 }
 0x2c9   :  { %v973_v30 = vor.u32 1.1754944e-38, %v972_v15  ;;  %vm971_vm13 = vcmp.eq.f32.partialorder %v970_v20, 8.507059e+37 }
 0x2ca   :  { %v992_v48 = vor.u32 1.1754944e-38, %v991_v18  ;;  %vm990_vm14 = vcmp.eq.f32.partialorder %v989_v19, 8.507059e+37 }
 0x2cb   :  { %v2014_v60 = vpop.eup %2013 }
 0x2cc   :  { %v999_v56 = vadd.f32 1.0, %v2014_v60 }
 0x2cd   :  { %v2016_v0 = vpop.eup %2015 }
 0x2ce   :  { %v2018_v6 = vpop.eup %2017  ;;  %v962_v9 = vmul.f32 %v2016_v0, %v960_v61  ;;  %2019 = vrcp.f32 %v999_v56  ;;  %vm967_vm7 = vweird.f32 %v2016_v0  ;;  %vm1005_vm1 = vweird.f32 %v999_v56 }
 0x2cf   :  { %v981_v35 = vmul.f32 %v2018_v6, %v979_v59  ;;  %2021 = vtanh.f32 %v955_v5  ;;  %vm986_vm8 = vweird.f32 %v2018_v6  ;;  %vm968_vm11 = vmor %vm966_vm9, %vm967_vm7 }
 0x2d0   :  { %v963_v62 = vsub.f32 1.0, %v962_v9  ;;  %vm987_vm12 = vmor %vm985_vm10, %vm986_vm8  ;;  %v1011_v9 = vand.u32 2147483648, %v999_v56 }
 0x2d1   :  { %v982_v13 = vsub.f32 1.0, %v981_v35 }
 0x2d2   :  { %v964_v14 = vmul.f32 %v2016_v0, %v963_v62  ;;  %v1012_v62 = vor.u32 1.1754944e-38, %v1011_v9  ;;  %v1022_v9 = vld [vmem:[#allocation2 + $0x90] sm:$0xff] }
 0x2d3   :  { %v983_v26 = vmul.f32 %v2018_v6, %v982_v13 }
 0x2d4   :  { %v2020_v31 = vpop.eup %2019  ;;  %v965_v36 = vadd.f32 %v2016_v0, %v964_v14 }
 0x2d5   :  { %v984_v25 = vadd.f32 %v2018_v6, %v983_v26  ;;  %v1001_v47 = vmul.f32 %v2020_v31, %v999_v56  ;;  %v2022_v22 = vpop.eup %2021  ;;  %vm1006_vm15 = vweird.f32 %v2020_v31 }
 0x2d6   :  { %v969_v49 = vsel %vm968_vm11, %v2016_v0, %v965_v36  ;;  %v1009_v0 = vand.u32 2147483647, %v999_v56  ;;  %vm1007_vm2 = vmor %vm1005_vm1, %vm1006_vm15  ;;  %v1021_v56 = vld [vmem:[#allocation2 + $0x88] sm:$0xff] }
 0x2d7   :  { %v974_v39 = vsel %vm971_vm13, %v973_v30, %v969_v49  ;;  %v988_v63 = vsel %vm987_vm12, %v2018_v6, %v984_v25  ;;  %v1002_v55 = vsub.f32 1.0, %v1001_v47  ;;  %v1023_v30 = vld [vmem:[#allocation2 + $0x98] sm:$0xff] }
 0x2d8   :  { %v993_v1 = vsel %vm990_vm14, %v992_v48, %v988_v63  ;;  %v1016_v60 = vmul.f32 %v2022_v22, %v974_v39  ;;  %vm1010_vm3 = vcmp.eq.f32.partialorder %v1009_v0, 8.507059e+37 }
 0x2d9   :  { %v1015_v37 = vmul.f32 %v993_v1, %v2552_v52  ;;  %v1003_v5 = vmul.f32 %v2020_v31, %v1002_v55  ;;  %v1020_v52 = vld [vmem:[#allocation2 + $0x80] sm:$0xff] }
 0x2db   :  { %v2592_v61 = vadd.f32 %v1016_v60, %v1015_v37  ;;  %v1004_v59 = vadd.f32 %v2020_v31, %v1003_v5 }
 0x2dd   :  { %2023 = vtanh.f32 %v2592_v61  ;;  %v1008_v35 = vsel %vm1007_vm2, %v2020_v31, %v1004_v59  ;;  %v261_v59 = vld [vmem:[%s260_s25] ss:$8 sm:$0xf] }
 0x2de   :  { %v1013_v13 = vsel %vm1010_vm3, %v1012_v62, %v1008_v35  ;;  %263 = vst.msk [vmem:[#allocation2 + $0xa0] ss:$8 sm:$0xf] %vm2358_vm0, %v261_v59  ;;  %v274_v35 = vld [vmem:[%s273_s26] ss:$8 sm:$0xf] }
 0x2df   :  { %276 = vst.msk [vmem:[#allocation2 + $0xa1] ss:$8 sm:$0xf] %vm2358_vm0, %v274_v35 }
 0x2e3   :  { %v2024_v6 = vpop.eup %2023 }
 0x2e4   :  { %v1019_v15 = vmul.f32 %v2024_v6, %v1013_v13 }
 0x2e6   :  { %v1024_v18 = vpack.c.bf16 %v1019_v15, %v1019_v15 }
 0x2e8   :  { %1033 = vmatmul.bf16.vlgmr.msra.gmra.mxu0 %v1024_v18  ;;  %1046 = vmatmul.bf16.vlgmr.msra.gmra.mxu1 %v1024_v18 }
 0x2e9   :  { %1059 = vmatmul.bf16.vlgmr.msra.gmra.mxu2 %v1024_v18  ;;  %1072 = vmatmul.bf16.vlgmr.msra.gmra.mxu3 %v1024_v18 }
 0x2ea   :  { %1273 = vmatpush.bf16.msra.mxu0 %v2250_v3  ;;  %1286 = vmatpush.bf16.msra.mxu1 %v2252_v7 }
 0x2eb   :  { %1299 = vmatpush.bf16.msra.mxu2 %v2265_v21  ;;  %1312 = vmatpush.bf16.msra.mxu3 %v2254_v8 }
 0x2ee   :  { %1274 = vmatpush.bf16.msra.mxu0 %v2257_v12  ;;  %1287 = vmatpush.bf16.msra.mxu1 %v2261_v16 }
 0x2ef   :  { %1300 = vmatpush.bf16.msra.mxu2 %v2277_v34  ;;  %1313 = vmatpush.bf16.msra.mxu3 %v2263_v17 }
 0x2f2   :  { %1275 = vmatpush.bf16.msra.mxu0 %v2269_v28  ;;  %1288 = vmatpush.bf16.msra.mxu1 %v2273_v32 }
 0x2f3   :  { %1301 = vmatpush.bf16.msra.mxu2 %v2283_v42  ;;  %1314 = vmatpush.bf16.msra.mxu3 %v2275_v33 }
 0x2f6   :  { %1276 = vmatpush.bf16.msra.mxu0 %v2281_v41  ;;  %1289 = vmatpush.bf16.msra.mxu1 %v2287_v45 }
 0x2f7   :  { %1302 = vmatpush.bf16.msra.mxu2 %v2295_v54  ;;  %1315 = vmatpush.bf16.msra.mxu3 %v2289_v46 }
 0x2fa   :  { %1277 = vmatpush.bf16.msra.mxu0 %v2293_v53  ;;  %1290 = vmatpush.bf16.msra.mxu1 %v2299_v57 }
 0x2fb   :  { %1303 = vmatpush.bf16.msra.mxu2 %v2307_v4  ;;  %1316 = vmatpush.bf16.msra.mxu3 %v2301_v58 }
 0x2fe   :  { %1278 = vmatpush.bf16.msra.mxu0 %v2305_v2  ;;  %1291 = vmatpush.bf16.msra.mxu1 %v2311_v10 }
 0x2ff   :  { %1304 = vmatpush.bf16.msra.mxu2 %v2323_v24  ;;  %1317 = vmatpush.bf16.msra.mxu3 %v2313_v11 }
 0x302   :  { %1279 = vmatpush.bf16.msra.mxu0 %v2321_v23  ;;  %1292 = vmatpush.bf16.msra.mxu1 %v2330_v27 }
 0x303   :  { %1305 = vmatpush.bf16.msra.mxu2 %v2344_v40  ;;  %1318 = vmatpush.bf16.msra.mxu3 %v2332_v29 }
 0x306   :  { %1280 = vmatpush.bf16.msra.mxu0 %v2339_v38  ;;  %1293 = vmatpush.bf16.msra.mxu1 %v2349_v43 }
 0x307   :  { %1306 = vmatpush.bf16.msra.mxu2 %v2369_v51  ;;  %1319 = vmatpush.bf16.msra.mxu3 %v2351_v44 }
 0x365   :  { %v1034_v14 = vpop.f32.mrf.mxu0  ;;  %v1047_v20 = vpop.f32.mrf.mxu1 }
 0x366   :  { %v1077_v26 = vadd.f32 %v1034_v14, %v1020_v52  ;;  %v1078_v19 = vadd.f32 %v1047_v20, %v1021_v56 }
 0x368   :  { %v1851_v31 = vmul.f32 -1.442695, %v1077_v26  ;;  %v1852_v36 = vmul.f32 -1.442695, %v1078_v19 }
 0x36a   :  { %2025 = vpow2.f32 %v1851_v31 }
 0x36b   :  { %2027 = vpow2.f32 %v1852_v36 }
 0x36c   :  { %v1060_v25 = vpop.f32.mrf.mxu2  ;;  %v1073_v47 = vpop.f32.mrf.mxu3 }
 0x36d   :  { %v1080_v48 = vadd.f32 %v1073_v47, %v1023_v30  ;;  %v1036_v49 = vpop.f32.mrf.mxu0  ;;  %v1049_v22 = vpop.f32.mrf.mxu1  ;;  %v1079_v13 = vadd.f32 %v1060_v25, %v1022_v9 }
 0x36f   :  { %v1853_v39 = vmul.f32 -1.442695, %v1080_v48 }
 0x370   :  { %v2026_v63 = vpop.eup %2025 }
 0x371   :  { %v2028_v55 = vpop.eup %2027  ;;  %v1084_v1 = vadd.f32 1.0, %v2026_v63  ;;  %2029 = vpow2.f32 %v1853_v39 }
 0x372   :  { %v1103_v60 = vadd.f32 1.0, %v2028_v55 }
 0x373   :  { %2031 = vrcp.f32 %v1084_v1  ;;  %v1096_v20 = vand.u32 2147483648, %v1084_v1  ;;  %v1094_v31 = vand.u32 2147483647, %v1084_v1  ;;  %vm1090_vm6 = vweird.f32 %v1084_v1 }
 0x374   :  { %2033 = vrcp.f32 %v1103_v60  ;;  %v1062_v37 = vpop.f32.mrf.mxu2  ;;  %v1075_v5 = vpop.f32.mrf.mxu3  ;;  %v1115_v26 = vand.u32 2147483648, %v1103_v60  ;;  %v1113_v30 = vand.u32 2147483647, %v1103_v60  ;;  %vm1109_vm7 = vweird.f32 %v1103_v60 }
 0x375   :  { %v1097_v25 = vor.u32 1.1754944e-38, %v1096_v20  ;;  %vm1095_vm10 = vcmp.eq.f32.partialorder %v1094_v31, 8.507059e+37 }
 0x376   :  { %v1116_v39 = vor.u32 1.1754944e-38, %v1115_v26  ;;  %vm1114_vm11 = vcmp.eq.f32.partialorder %v1113_v30, 8.507059e+37 }
 0x377   :  { %v2030_v0 = vpop.eup %2029 }
 0x378   :  { %v1123_v62 = vadd.f32 1.0, %v2030_v0 }
 0x379   :  { %v2032_v6 = vpop.eup %2031 }
 0x37a   :  { %v2034_v15 = vpop.eup %2033  ;;  %v1086_v18 = vmul.f32 %v2032_v6, %v1084_v1  ;;  %2035 = vrcp.f32 %v1123_v62  ;;  %vm1091_vm4 = vweird.f32 %v2032_v6  ;;  %vm1129_vm13 = vweird.f32 %v1123_v62 }
 0x37b   :  { %v1105_v52 = vmul.f32 %v2034_v15, %v1103_v60  ;;  %2037 = vtanh.f32 %v1079_v13  ;;  %vm1110_vm5 = vweird.f32 %v2034_v15  ;;  %vm1092_vm8 = vmor %vm1090_vm6, %vm1091_vm4 }
 0x37c   :  { %v1087_v56 = vsub.f32 1.0, %v1086_v18  ;;  %vm1111_vm9 = vmor %vm1109_vm7, %vm1110_vm5  ;;  %v1135_v18 = vand.u32 2147483648, %v1123_v62 }
 0x37d   :  { %v1106_v14 = vsub.f32 1.0, %v1105_v52 }
 0x37e   :  { %v1088_v19 = vmul.f32 %v2032_v6, %v1087_v56  ;;  %v1136_v56 = vor.u32 1.1754944e-38, %v1135_v18 }
 0x37f   :  { %v1107_v36 = vmul.f32 %v2034_v15, %v1106_v14 }
 0x380   :  { %v2036_v47 = vpop.eup %2035  ;;  %v1089_v48 = vadd.f32 %v2032_v6, %v1088_v19 }
 0x381   :  { %v1108_v49 = vadd.f32 %v2034_v15, %v1107_v36  ;;  %v1125_v22 = vmul.f32 %v2036_v47, %v1123_v62  ;;  %v2038_v55 = vpop.eup %2037  ;;  %vm1130_vm12 = vweird.f32 %v2036_v47 }
 0x382   :  { %v1093_v63 = vsel %vm1092_vm8, %v2032_v6, %v1089_v48  ;;  %v1133_v6 = vand.u32 2147483647, %v1123_v62  ;;  %vm1131_vm14 = vmor %vm1129_vm13, %vm1130_vm12 }
 0x383   :  { %v1098_v37 = vsel %vm1095_vm10, %v1097_v25, %v1093_v63  ;;  %v1112_v5 = vsel %vm1111_vm9, %v2034_v15, %v1108_v49  ;;  %v1126_v59 = vsub.f32 1.0, %v1125_v22 }
 0x384   :  { %v1117_v9 = vsel %vm1114_vm11, %v1116_v39, %v1112_v5  ;;  %v1140_v0 = vmul.f32 %v2038_v55, %v1098_v37  ;;  %vm1134_vm15 = vcmp.eq.f32.partialorder %v1133_v6, 8.507059e+37 }
 0x385   :  { %v1139_v35 = vmul.f32 %v1117_v9, %v2592_v61  ;;  %v1127_v13 = vmul.f32 %v2036_v47, %v1126_v59 }
 0x387   :  { %v2632_v1 = vadd.f32 %v1140_v0, %v1139_v35  ;;  %v1128_v60 = vadd.f32 %v2036_v47, %v1127_v13 }
 0x389   :  { %2039 = vtanh.f32 %v2632_v1  ;;  %v1132_v52 = vsel %vm1131_vm14, %v2036_v47, %v1128_v60 }
 0x38a   :  { %v1137_v14 = vsel %vm1134_vm15, %v1136_v56, %v1132_v52 }
 0x38f   :  { %v2040_v15 = vpop.eup %2039 }
 0x390   :  { %v1143_v20 = vmul.f32 %v2040_v15, %v1137_v14 }
 0x392   :  { %v1148_v26 = vpack.c.bf16 %v1143_v20, %v1143_v20 }
 0x394   :  { %1157 = vmatmul.bf16.vlgmr.msrb.gmra.mxu0 %v1148_v26  ;;  %1170 = vmatmul.bf16.vlgmr.msrb.gmra.mxu1 %v1148_v26 }
 0x395   :  { %1183 = vmatmul.bf16.vlgmr.msrb.gmra.mxu2 %v1148_v26  ;;  %1196 = vmatmul.bf16.vlgmr.msrb.gmra.mxu3 %v1148_v26 }
 0x396   :  { %1397 = vmatpush.bf16.msrb.mxu0 %v2250_v3  ;;  %1410 = vmatpush.bf16.msrb.mxu1 %v2252_v7  ;;  %v1144_v3 = vld [vmem:[#allocation2 + $0xa0] sm:$0xff]  ;;  %v1145_v7 = vld [vmem:[#allocation2 + $0xa8] sm:$0xff] }
 0x397   :  { %1423 = vmatpush.bf16.msrb.mxu2 %v2265_v21  ;;  %1436 = vmatpush.bf16.msrb.mxu3 %v2254_v8 }
 0x39a   :  { %1398 = vmatpush.bf16.msrb.mxu0 %v2257_v12  ;;  %1411 = vmatpush.bf16.msrb.mxu1 %v2261_v16 }
 0x39b   :  { %1424 = vmatpush.bf16.msrb.mxu2 %v2277_v34  ;;  %1437 = vmatpush.bf16.msrb.mxu3 %v2263_v17 }
 0x39e   :  { %1399 = vmatpush.bf16.msrb.mxu0 %v2269_v28  ;;  %1412 = vmatpush.bf16.msrb.mxu1 %v2273_v32  ;;  %v1147_v32 = vld [vmem:[#allocation2 + $0xb8] sm:$0xff] }
 0x39f   :  { %1425 = vmatpush.bf16.msrb.mxu2 %v2283_v42  ;;  %1438 = vmatpush.bf16.msrb.mxu3 %v2275_v33 }
 0x3a2   :  { %1400 = vmatpush.bf16.msrb.mxu0 %v2281_v41  ;;  %1413 = vmatpush.bf16.msrb.mxu1 %v2287_v45 }
 0x3a3   :  { %1426 = vmatpush.bf16.msrb.mxu2 %v2295_v54  ;;  %1439 = vmatpush.bf16.msrb.mxu3 %v2289_v46 }
 0x3a6   :  { %1401 = vmatpush.bf16.msrb.mxu0 %v2293_v53  ;;  %1414 = vmatpush.bf16.msrb.mxu1 %v2299_v57 }
 0x3a7   :  { %1427 = vmatpush.bf16.msrb.mxu2 %v2307_v4  ;;  %1440 = vmatpush.bf16.msrb.mxu3 %v2301_v58 }
 0x3aa   :  { %1402 = vmatpush.bf16.msrb.mxu0 %v2305_v2  ;;  %1415 = vmatpush.bf16.msrb.mxu1 %v2311_v10  ;;  %v287_v10 = vld [vmem:[%s286_s12] ss:$8 sm:$0xf] }
 0x3ab   :  { %1428 = vmatpush.bf16.msrb.mxu2 %v2323_v24  ;;  %1441 = vmatpush.bf16.msrb.mxu3 %v2313_v11  ;;  %v1146_v11 = vld [vmem:[#allocation2 + $0xb0] sm:$0xff]  ;;  %289 = vst.msk [vmem:[#allocation2 + $0xc0] ss:$8 sm:$0xf] %vm2358_vm0, %v287_v10 }
 0x3ac   :  { %v300_v24 = vld [vmem:[%s299_s1] ss:$8 sm:$0xf] }
 0x3ad   :  { %302 = vst.msk [vmem:[#allocation2 + $0xc1] ss:$8 sm:$0xf] %vm2358_vm0, %v300_v24 }
 0x3ae   :  { %1403 = vmatpush.bf16.msrb.mxu0 %v2321_v23  ;;  %1416 = vmatpush.bf16.msrb.mxu1 %v2330_v27 }
 0x3af   :  { %1429 = vmatpush.bf16.msrb.mxu2 %v2344_v40  ;;  %1442 = vmatpush.bf16.msrb.mxu3 %v2332_v29 }
 0x3b2   :  { %1404 = vmatpush.bf16.msrb.mxu0 %v2339_v38  ;;  %1417 = vmatpush.bf16.msrb.mxu1 %v2349_v43 }
 0x3b3   :  { %1430 = vmatpush.bf16.msrb.mxu2 %v2369_v51  ;;  %1443 = vmatpush.bf16.msrb.mxu3 %v2351_v44 }
 0x411   :  { %v1158_v8 = vpop.f32.mrf.mxu0  ;;  %v1171_v12 = vpop.f32.mrf.mxu1 }
 0x412   :  { %v1201_v16 = vadd.f32 %v1158_v8, %v1144_v3  ;;  %v1202_v17 = vadd.f32 %v1171_v12, %v1145_v7  ;;  %v1269_v8 = vld [vmem:[#allocation2 + $0xc8] sm:$0xff] }
 0x414   :  { %v1854_v21 = vmul.f32 -1.442695, %v1201_v16  ;;  %v1855_v28 = vmul.f32 -1.442695, %v1202_v17 }
 0x416   :  { %2041 = vpow2.f32 %v1854_v21 }
 0x417   :  { %2043 = vpow2.f32 %v1855_v28 }
 0x418   :  { %v1184_v33 = vpop.f32.mrf.mxu2  ;;  %v1197_v34 = vpop.f32.mrf.mxu3 }
 0x419   :  { %v1204_v41 = vadd.f32 %v1197_v34, %v1147_v32  ;;  %v1160_v42 = vpop.f32.mrf.mxu0  ;;  %v1173_v45 = vpop.f32.mrf.mxu1  ;;  %v1203_v38 = vadd.f32 %v1184_v33, %v1146_v11  ;;  %v1271_v33 = vld [vmem:[#allocation2 + $0xd8] sm:$0xff] }
 0x41a   :  { %v313_v11 = vld [vmem:[%s312_s4] ss:$8 sm:$0xf] }
 0x41b   :  { %v1856_v46 = vmul.f32 -1.442695, %v1204_v41  ;;  %315 = vst.msk [vmem:[#allocation2 + $0xe0] ss:$8 sm:$0xf] %vm2358_vm0, %v313_v11  ;;  %v1943_v11 = vld [vmem:[#allocation9] sm:$0xff] }
 0x41c   :  { %v2042_v53 = vpop.eup %2041 }
 0x41d   :  { %v2044_v54 = vpop.eup %2043  ;;  %v1208_v57 = vadd.f32 1.0, %v2042_v53  ;;  %2045 = vpow2.f32 %v1856_v46 }
 0x41e   :  { %v1227_v58 = vadd.f32 1.0, %v2044_v54 }
 0x41f   :  { %2047 = vrcp.f32 %v1208_v57  ;;  %v1220_v62 = vand.u32 2147483648, %v1208_v57  ;;  %v1218_v36 = vand.u32 2147483647, %v1208_v57  ;;  %vm1214_vm3 = vweird.f32 %v1208_v57 }
 0x420   :  { %2049 = vrcp.f32 %v1227_v58  ;;  %v1186_v2 = vpop.f32.mrf.mxu2  ;;  %v1199_v4 = vpop.f32.mrf.mxu3  ;;  %v1239_v19 = vand.u32 2147483648, %v1227_v58  ;;  %v1237_v47 = vand.u32 2147483647, %v1227_v58  ;;  %vm1233_vm4 = vweird.f32 %v1227_v58 }
 0x421   :  { %v1221_v49 = vor.u32 1.1754944e-38, %v1220_v62  ;;  %vm1219_vm7 = vcmp.eq.f32.partialorder %v1218_v36, 8.507059e+37 }
 0x422   :  { %v1240_v63 = vor.u32 1.1754944e-38, %v1239_v19  ;;  %vm1238_vm8 = vcmp.eq.f32.partialorder %v1237_v47, 8.507059e+37 }
 0x423   :  { %v2046_v23 = vpop.eup %2045 }
 0x424   :  { %v1247_v27 = vadd.f32 1.0, %v2046_v23  ;;  %v1270_v23 = vld [vmem:[#allocation2 + $0xd0] sm:$0xff] }
 0x425   :  { %v2048_v29 = vpop.eup %2047 }
 0x426   :  { %v2050_v40 = vpop.eup %2049  ;;  %v1210_v43 = vmul.f32 %v2048_v29, %v1208_v57  ;;  %2051 = vrcp.f32 %v1247_v27  ;;  %vm1215_vm1 = vweird.f32 %v2048_v29  ;;  %v1259_v52 = vand.u32 2147483648, %v1247_v27 }
 0x427   :  { %v1229_v44 = vmul.f32 %v2050_v40, %v1227_v58  ;;  %2053 = vtanh.f32 %v1203_v38  ;;  %vm1234_vm2 = vweird.f32 %v2050_v40  ;;  %vm1216_vm5 = vmor %vm1214_vm3, %vm1215_vm1  ;;  %vm1253_vm10 = vweird.f32 %v1247_v27 }
 0x428   :  { %v1211_v51 = vsub.f32 1.0, %v1210_v43  ;;  %vm1235_vm6 = vmor %vm1233_vm4, %vm1234_vm2  ;;  %v1257_v56 = vand.u32 2147483647, %v1247_v27  ;;  %v1260_v14 = vor.u32 1.1754944e-38, %v1259_v52 }
 0x429   :  { %v1230_v61 = vsub.f32 1.0, %v1229_v44 }
 0x42a   :  { %v1212_v31 = vmul.f32 %v2048_v29, %v1211_v51  ;;  %vm1258_vm12 = vcmp.eq.f32.partialorder %v1257_v56, 8.507059e+37 }
 0x42b   :  { %v1231_v30 = vmul.f32 %v2050_v40, %v1230_v61 }
 0x42c   :  { %v2052_v48 = vpop.eup %2051  ;;  %v1213_v25 = vadd.f32 %v2048_v29, %v1212_v31 }
 0x42d   :  { %v1232_v22 = vadd.f32 %v2050_v40, %v1231_v30  ;;  %v1249_v39 = vmul.f32 %v2052_v48, %v1247_v27  ;;  %v2054_v37 = vpop.eup %2053  ;;  %vm1254_vm9 = vweird.f32 %v2052_v48  ;;  %v326_v27 = vld [vmem:[%s325_s23] ss:$8 sm:$0xf] }
 0x42e   :  { %v1217_v55 = vsel %vm1216_vm5, %v2048_v29, %v1213_v25  ;;  %vm1255_vm11 = vmor %vm1253_vm10, %vm1254_vm9  ;;  %328 = vst.msk [vmem:[#allocation2 + $0xe1] ss:$8 sm:$0xf] %vm2358_vm0, %v326_v27 }
 0x42f   :  { %v1222_v5 = vsel %vm1219_vm7, %v1221_v49, %v1217_v55  ;;  %v1236_v59 = vsel %vm1235_vm6, %v2050_v40, %v1232_v22  ;;  %v1250_v9 = vsub.f32 1.0, %v1249_v39 }
 0x430   :  { %v1241_v0 = vsel %vm1238_vm8, %v1240_v63, %v1236_v59  ;;  %v1264_v35 = vmul.f32 %v2054_v37, %v1222_v5 }
 0x431   :  { %v1263_v13 = vmul.f32 %v1241_v0, %v2632_v1  ;;  %v1251_v60 = vmul.f32 %v2052_v48, %v1250_v9  ;;  %v1268_v1 = vld [vmem:[#allocation2 + $0xc0] sm:$0xff] }
 0x433   :  { %v2672_v18 = vadd.f32 %v1264_v35, %v1263_v13  ;;  %v1252_v6 = vadd.f32 %v2052_v48, %v1251_v60 }
 0x435   :  { %2055 = vtanh.f32 %v2672_v18  ;;  %v1256_v15 = vsel %vm1255_vm11, %v2052_v48, %v1252_v6 }
 0x436   :  { %v1261_v26 = vsel %vm1258_vm12, %v1260_v14, %v1256_v15 }
 0x43b   :  { %v2056_v20 = vpop.eup %2055 }
 0x43c   :  { %v1267_v3 = vmul.f32 %v2056_v20, %v1261_v26 }
 0x43e   :  { %v1272_v7 = vpack.c.bf16 %v1267_v3, %v1267_v3 }
 0x440   :  { %1281 = vmatmul.bf16.vlgmr.msra.gmra.mxu0 %v1272_v7  ;;  %1294 = vmatmul.bf16.vlgmr.msra.gmra.mxu1 %v1272_v7 }
 0x441   :  { %1307 = vmatmul.bf16.vlgmr.msra.gmra.mxu2 %v1272_v7  ;;  %1320 = vmatmul.bf16.vlgmr.msra.gmra.mxu3 %v1272_v7 }
 0x4bd   :  { %v1282_v12 = vpop.f32.mrf.mxu0  ;;  %v1295_v16 = vpop.f32.mrf.mxu1 }
 0x4be   :  { %v1325_v17 = vadd.f32 %v1282_v12, %v1268_v1  ;;  %v1326_v21 = vadd.f32 %v1295_v16, %v1269_v8  ;;  %v1949_v8 = vld [vmem:[#allocation9 + $0x30] sm:$0xff]  ;;  %v1948_v12 = vld [vmem:[#allocation9 + $0x28] sm:$0xff]  ;;  %v1947_v16 = vld [vmem:[#allocation9 + $0x20] sm:$0xff] }
 0x4c0   :  { %v1857_v28 = vmul.f32 -1.442695, %v1325_v17  ;;  %v1858_v32 = vmul.f32 -1.442695, %v1326_v21  ;;  %v1392_v17 = vld [vmem:[#allocation2 + $0xe0] sm:$0xff]  ;;  %v1393_v21 = vld [vmem:[#allocation2 + $0xe8] sm:$0xff] }
 0x4c2   :  { %2057 = vpow2.f32 %v1857_v28  ;;  %v1946_v28 = vld [vmem:[#allocation9 + $0x18] sm:$0xff] }
 0x4c3   :  { %2059 = vpow2.f32 %v1858_v32 }
 0x4c4   :  { %v1308_v34 = vpop.f32.mrf.mxu2  ;;  %v1321_v41 = vpop.f32.mrf.mxu3 }
 0x4c5   :  { %v1328_v42 = vadd.f32 %v1321_v41, %v1271_v33  ;;  %v1284_v45 = vpop.f32.mrf.mxu0  ;;  %v1297_v46 = vpop.f32.mrf.mxu1  ;;  %v1327_v40 = vadd.f32 %v1308_v34, %v1270_v23 }
 0x4c7   :  { %v1859_v53 = vmul.f32 -1.442695, %v1328_v42  ;;  %v1945_v42 = vld [vmem:[#allocation9 + $0x10] sm:$0xff] }
 0x4c8   :  { %v2058_v54 = vpop.eup %2057 }
 0x4c9   :  { %v2060_v57 = vpop.eup %2059  ;;  %v1332_v58 = vadd.f32 1.0, %v2058_v54  ;;  %2061 = vpow2.f32 %v1859_v53  ;;  %v1944_v53 = vld [vmem:[#allocation9 + $0x8] sm:$0xff]  ;;  %v1395_v54 = vld [vmem:[#allocation2 + $0xf8] sm:$0xff] }
 0x4ca   :  { %v1351_v2 = vadd.f32 1.0, %v2060_v57 }
 0x4cb   :  { %2063 = vrcp.f32 %v1332_v58  ;;  %v1344_v19 = vand.u32 2147483648, %v1332_v58  ;;  %v1342_v30 = vand.u32 2147483647, %v1332_v58  ;;  %vm1338_vm0 = vweird.f32 %v1332_v58 }
 0x4cc   :  { %2065 = vrcp.f32 %v1351_v2  ;;  %v1310_v4 = vpop.f32.mrf.mxu2  ;;  %v1323_v10 = vpop.f32.mrf.mxu3  ;;  %v1363_v31 = vand.u32 2147483648, %v1351_v2  ;;  %v1361_v48 = vand.u32 2147483647, %v1351_v2  ;;  %vm1357_vm15 = vweird.f32 %v1351_v2 }
 0x4cd   :  { %v1345_v49 = vor.u32 1.1754944e-38, %v1344_v19  ;;  %vm1343_vm3 = vcmp.eq.f32.partialorder %v1342_v30, 8.507059e+37 }
 0x4ce   :  { %v1364_v63 = vor.u32 1.1754944e-38, %v1363_v31  ;;  %vm1362_vm4 = vcmp.eq.f32.partialorder %v1361_v48, 8.507059e+37 }
 0x4cf   :  { %v2062_v24 = vpop.eup %2061 }
 0x4d0   :  { %v1371_v29 = vadd.f32 1.0, %v2062_v24 }
 0x4d1   :  { %v2064_v38 = vpop.eup %2063 }
 0x4d2   :  { %v2066_v43 = vpop.eup %2065  ;;  %v1334_v44 = vmul.f32 %v2064_v38, %v1332_v58  ;;  %2067 = vrcp.f32 %v1371_v29  ;;  %vm1339_vm13 = vweird.f32 %v2064_v38  ;;  %v1383_v56 = vand.u32 2147483648, %v1371_v29 }
 0x4d3   :  { %v1353_v51 = vmul.f32 %v2066_v43, %v1351_v2  ;;  %2069 = vtanh.f32 %v1327_v40  ;;  %vm1358_vm14 = vweird.f32 %v2066_v43  ;;  %vm1340_vm1 = vmor %vm1338_vm0, %vm1339_vm13  ;;  %vm1377_vm6 = vweird.f32 %v1371_v29 }
 0x4d4   :  { %v1335_v61 = vsub.f32 1.0, %v1334_v44  ;;  %vm1359_vm2 = vmor %vm1357_vm15, %vm1358_vm14  ;;  %v1381_v15 = vand.u32 2147483647, %v1371_v29  ;;  %v1384_v20 = vor.u32 1.1754944e-38, %v1383_v56  ;;  %v1394_v44 = vld [vmem:[#allocation2 + $0xf0] sm:$0xff] }
 0x4d5   :  { %v1354_v62 = vsub.f32 1.0, %v1353_v51 }
 0x4d6   :  { %v1336_v36 = vmul.f32 %v2064_v38, %v1335_v61  ;;  %vm1382_vm8 = vcmp.eq.f32.partialorder %v1381_v15, 8.507059e+37 }
 0x4d7   :  { %v1355_v47 = vmul.f32 %v2066_v43, %v1354_v62 }
 0x4d8   :  { %v2068_v25 = vpop.eup %2067  ;;  %v1337_v50 = vadd.f32 %v2064_v38, %v1336_v36 }
 0x4d9   :  { %v1356_v22 = vadd.f32 %v2066_v43, %v1355_v47  ;;  %v1373_v39 = vmul.f32 %v2068_v25, %v1371_v29  ;;  %v2070_v37 = vpop.eup %2069  ;;  %vm1378_vm5 = vweird.f32 %v2068_v25 }
 0x4da   :  { %v1341_v55 = vsel %vm1340_vm1, %v2064_v38, %v1337_v50  ;;  %vm1379_vm7 = vmor %vm1377_vm6, %vm1378_vm5 }
 0x4db   :  { %v1346_v5 = vsel %vm1343_vm3, %v1345_v49, %v1341_v55  ;;  %v1360_v59 = vsel %vm1359_vm2, %v2066_v43, %v1356_v22  ;;  %v1374_v9 = vsub.f32 1.0, %v1373_v39 }
 0x4dc   :  { %v1365_v0 = vsel %vm1362_vm4, %v1364_v63, %v1360_v59  ;;  %v1388_v35 = vmul.f32 %v2070_v37, %v1346_v5 }
 0x4dd   :  { %v1387_v13 = vmul.f32 %v1365_v0, %v2672_v18  ;;  %v1375_v60 = vmul.f32 %v2068_v25, %v1374_v9  ;;  %v1950_v18 = vld [vmem:[#allocation9 + $0x38] sm:$0xff] }
 0x4de   :  { %1587 = vmatpush.bf16.msra.mxu0 %v1950_v18 }
 0x4df   :  { %v2680_v6 = vadd.f32 %v1388_v35, %v1387_v13  ;;  %v1376_v52 = vadd.f32 %v2068_v25, %v1375_v60 }
 0x4e1   :  { %2071 = vtanh.f32 %v2680_v6  ;;  %v1380_v14 = vsel %vm1379_vm7, %v2068_v25, %v1376_v52 }
 0x4e2   :  { %v1385_v3 = vsel %vm1382_vm8, %v1384_v20, %v1380_v14  ;;  %1588 = vmatpush.bf16.msra.mxu0 %v1949_v8 }
 0x4e6   :  { %1589 = vmatpush.bf16.msra.mxu0 %v1948_v12 }
 0x4e7   :  { %v2072_v26 = vpop.eup %2071 }
 0x4e8   :  { %v1391_v7 = vmul.f32 %v2072_v26, %v1385_v3 }
 0x4ea   :  { %v1396_v1 = vpack.c.bf16 %v1391_v7, %v1391_v7  ;;  %1590 = vmatpush.bf16.msra.mxu0 %v1947_v16 }
 0x4ec   :  { %1405 = vmatmul.bf16.vlgmr.msrb.gmra.mxu0 %v1396_v1  ;;  %1418 = vmatmul.bf16.vlgmr.msrb.gmra.mxu1 %v1396_v1 }
 0x4ed   :  { %1431 = vmatmul.bf16.vlgmr.msrb.gmra.mxu2 %v1396_v1  ;;  %1444 = vmatmul.bf16.vlgmr.msrb.gmra.mxu3 %v1396_v1 }
 0x4ee   :  { %1591 = vmatpush.bf16.msra.mxu0 %v1946_v28  ;;  %v1960_v28 = vld [vmem:[%s2702_s6] ss:$0 sm:$0xff] }
 0x4f2   :  { %1592 = vmatpush.bf16.msra.mxu0 %v1945_v42 }
 0x4f6   :  { %1593 = vmatpush.bf16.msra.mxu0 %v1944_v53 }
 0x4fa   :  { %1594 = vmatpush.bf16.msra.mxu0 %v1943_v11 }
 0x569   :  { %v1406_v32 = vpop.f32.mrf.mxu0  ;;  %v1419_v33 = vpop.f32.mrf.mxu1 }
 0x56a   :  { %v1449_v34 = vadd.f32 %v1406_v32, %v1392_v17  ;;  %v1450_v41 = vadd.f32 %v1419_v33, %v1393_v21 }
 0x56c   :  { %v1860_v45 = vmul.f32 -1.442695, %v1449_v34  ;;  %v1861_v46 = vmul.f32 -1.442695, %v1450_v41 }
 0x56e   :  { %2073 = vpow2.f32 %v1860_v45 }
 0x56f   :  { %2075 = vpow2.f32 %v1861_v46 }
 0x570   :  { %v1432_v57 = vpop.f32.mrf.mxu2  ;;  %v1445_v58 = vpop.f32.mrf.mxu3 }
 0x571   :  { %v1452_v2 = vadd.f32 %v1445_v58, %v1395_v54  ;;  %v1408_v4 = vpop.f32.mrf.mxu0  ;;  %v1421_v10 = vpop.f32.mrf.mxu1  ;;  %v1451_v19 = vadd.f32 %v1432_v57, %v1394_v44 }
 0x573   :  { %v1862_v23 = vmul.f32 -1.442695, %v1452_v2 }
 0x574   :  { %v2074_v24 = vpop.eup %2073 }
 0x575   :  { %v2076_v27 = vpop.eup %2075  ;;  %v1456_v29 = vadd.f32 1.0, %v2074_v24  ;;  %2077 = vpow2.f32 %v1862_v23 }
 0x576   :  { %v1475_v38 = vadd.f32 1.0, %v2076_v27 }
 0x577   :  { %2079 = vrcp.f32 %v1456_v29  ;;  %v1468_v25 = vand.u32 2147483648, %v1456_v29  ;;  %v1466_v22 = vand.u32 2147483647, %v1456_v29  ;;  %vm1462_vm11 = vweird.f32 %v1456_v29 }
 0x578   :  { %2081 = vrcp.f32 %v1475_v38  ;;  %v1434_v40 = vpop.f32.mrf.mxu2  ;;  %v1447_v43 = vpop.f32.mrf.mxu3  ;;  %v1487_v50 = vand.u32 2147483648, %v1475_v38  ;;  %v1485_v63 = vand.u32 2147483647, %v1475_v38  ;;  %vm1481_vm12 = vweird.f32 %v1475_v38 }
 0x579   :  { %v1469_v5 = vor.u32 1.1754944e-38, %v1468_v25  ;;  %vm1467_vm0 = vcmp.eq.f32.partialorder %v1466_v22, 8.507059e+37 }
 0x57a   :  { %v1488_v0 = vor.u32 1.1754944e-38, %v1487_v50  ;;  %vm1486_vm15 = vcmp.eq.f32.partialorder %v1485_v63, 8.507059e+37 }
 0x57b   :  { %v2078_v51 = vpop.eup %2077 }
 0x57c   :  { %v1495_v61 = vadd.f32 1.0, %v2078_v51 }
 0x57d   :  { %v2080_v62 = vpop.eup %2079 }
 0x57e   :  { %v2082_v31 = vpop.eup %2081  ;;  %v1458_v36 = vmul.f32 %v2080_v62, %v1456_v29  ;;  %2083 = vrcp.f32 %v1495_v61  ;;  %vm1463_vm9 = vweird.f32 %v2080_v62  ;;  %v1507_v1 = vand.u32 2147483648, %v1495_v61 }
 0x57f   :  { %v1477_v30 = vmul.f32 %v2082_v31, %v1475_v38  ;;  %2085 = vtanh.f32 %v1451_v19  ;;  %vm1482_vm10 = vweird.f32 %v2082_v31  ;;  %vm1464_vm13 = vmor %vm1462_vm11, %vm1463_vm9  ;;  %vm1501_vm2 = vweird.f32 %v1495_v61 }
 0x580   :  { %v1459_v47 = vsub.f32 1.0, %v1458_v36  ;;  %vm1483_vm14 = vmor %vm1481_vm12, %vm1482_vm10  ;;  %v1505_v18 = vand.u32 2147483647, %v1495_v61  ;;  %v1508_v12 = vor.u32 1.1754944e-38, %v1507_v1 }
 0x581   :  { %v1478_v48 = vsub.f32 1.0, %v1477_v30 }
 0x582   :  { %v1460_v49 = vmul.f32 %v2080_v62, %v1459_v47  ;;  %vm1506_vm4 = vcmp.eq.f32.partialorder %v1505_v18, 8.507059e+37 }
 0x583   :  { %v1479_v39 = vmul.f32 %v2082_v31, %v1478_v48 }
 0x584   :  { %v2084_v55 = vpop.eup %2083  ;;  %v1461_v37 = vadd.f32 %v2080_v62, %v1460_v49 }
 0x585   :  { %v1480_v59 = vadd.f32 %v2082_v31, %v1479_v39  ;;  %v1497_v9 = vmul.f32 %v2084_v55, %v1495_v61  ;;  %v2086_v13 = vpop.eup %2085  ;;  %vm1502_vm1 = vweird.f32 %v2084_v55 }
 0x586   :  { %v1465_v35 = vsel %vm1464_vm13, %v2080_v62, %v1461_v37  ;;  %vm1503_vm3 = vmor %vm1501_vm2, %vm1502_vm1 }
 0x587   :  { %v1470_v60 = vsel %vm1467_vm0, %v1469_v5, %v1465_v35  ;;  %v1484_v52 = vsel %vm1483_vm14, %v2082_v31, %v1480_v59  ;;  %v1498_v56 = vsub.f32 1.0, %v1497_v9 }
 0x588   :  { %v1489_v15 = vsel %vm1486_vm15, %v1488_v0, %v1484_v52  ;;  %v1512_v14 = vmul.f32 %v2086_v13, %v1470_v60 }
 0x589   :  { %v1511_v20 = vmul.f32 %v1489_v15, %v2680_v6  ;;  %v1499_v26 = vmul.f32 %v2084_v55, %v1498_v56 }
 0x58b   :  { %v1513_v3 = vadd.f32 %v1512_v14, %v1511_v20  ;;  %v1500_v7 = vadd.f32 %v2084_v55, %v1499_v26 }
 0x58d   :  { %2087 = vtanh.f32 %v1513_v3  ;;  %1517 = vst [vmem:[%s2705_s9] sm:$0xff] %v1513_v3  ;;  %v1504_v8 = vsel %vm1503_vm3, %v2084_v55, %v1500_v7 }
 0x58e   :  { %v1509_v17 = vsel %vm1506_vm4, %v1508_v12, %v1504_v8 }
 0x593   :  { %v2088_v16 = vpop.eup %2087 }
 0x594   :  { %v1515_v21 = vmul.f32 %v2088_v16, %v1509_v17 }
 0x596   :  { %1516 = vst [vmem:[%s2704_s8] sm:$0xff] %v1515_v21  ;;  %v1518_v6 = vpack.c.bf16 %v1515_v21, %v1515_v21 }
 0x598   :  { %1595 = vmatmul.bf16.vlgmr.msra.gmra.mxu0 %v1518_v6 }
 0x615   :  { %v1596_v32 = vpop.f32.mrf.mxu0 }
 0x616   :  { %v1597_v33 = vadd.f32 %v1960_v28, %v1596_v32 }
 0x618   :  { %1600 = vst [vmem:[%s2703_s7] sm:$0xff] %v1597_v33 }
 0x61d   :  { %v1598_v34 = vpop.f32.mrf.mxu0 }
 0x61e   :  { %1613 = vsyncpa [#allocation4], 1 }
 0x61f   :  { %1614 = vsyncpa [#allocation8], 1 }
 0x620   :  { %1615 = vsyncpa [#allocation5], 1 }

</bundles_post_ra>
